<compile_context>
chip_gen: v7x
topology: tpu7x:2x2x1
jax: 0.10.0
libtpu: 0.0.40
codegen_flags: <defaults>
</compile_context>

<pallas_src>
import jax
import jax.numpy as jnp
from jax.experimental import pallas as pl
from jax.experimental.pallas import tpu as pltpu

# ---- model hyper-parameters (small, consistent with wav [B, 1, T]) ----------
B = 2            # batch
T = 1024         # waveform length
K = 8            # conv kernel size
STRIDE = 8       # conv stride (== K, non-overlapping frames)
C = 32           # conv output channels
NC = 10          # number of classes (speakers)
TP = (T - K) // STRIDE + 1   # = 128 time frames after conv
THRESHOLD = 0.25             # base_model.threshold

PAD_R, PAD_C = 8, 128        # lane-dense (sublane, lane) padded output tile


# ----------------------------- fused Pallas kernel ---------------------------
def _fused_kernel(patches_ref, wconv_ref, bconv_ref, wfc_ref, bfc_ref,
                  logits_ref, scores_ref, dec_ref):
    """Conv1d + ReLU + global-avg-pool + Linear + softmax + thresholded argmax."""
    patches = patches_ref[...]                                    # [B*TP, K]

    # Conv1d(1->C, kernel=K, stride=K) + bias as K=8 broadcast-FMAs on the VPU
    # (a K=8 MXU contraction would leave the systolic array ~94% idle).
    feats = jnp.zeros((B * TP, C), jnp.float32) + bconv_ref[...]  # [B*TP, C]
    for k in range(K):                                            # static, K=8
        feats = feats + patches[:, k:k + 1] * wconv_ref[k:k + 1, :]
    feats = jnp.maximum(feats, 0.0)                               # ReLU

    # Global average pool over time: leading-dim reshape + reduction
    # (replaces the dense O(B^2*TP) pooling-matrix matmul and its input DMA).
    pooled = jnp.sum(feats.reshape(B, TP, C), axis=1) * (1.0 / TP)   # [B, C]

    logits = jnp.dot(pooled, wfc_ref[...],
                     preferred_element_type=jnp.float32) + bfc_ref[...]  # [B, NC]

    # softmax over classes (dim=1); EUP reciprocal frees VPU slots.
    m = jnp.max(logits, axis=-1, keepdims=True)                   # [B, 1]
    e = jnp.exp(logits - m)
    denom = jnp.sum(e, axis=-1, keepdims=True)
    scores = e * pl.reciprocal(denom, approx=True)

    # thresholded argmax; argmax taken on logits (== argmax of softmax, avoids
    # float-equality tie issues after exp/div).
    iota = jax.lax.broadcasted_iota(jnp.int32, logits.shape, 1)
    arg = jnp.min(jnp.where(logits == m, iota, NC), axis=-1, keepdims=True)  # first argmax
    smax = jnp.max(scores, axis=-1, keepdims=True)                # [B, 1]
    # TODO(synk): torch returns int64 decisions; TPU kernel emits int32.
    dec = jnp.where(smax > THRESHOLD, arg, -1).astype(jnp.int32)  # [B, 1]

    # lane-dense (8, 128) padded output tiles; valid data in the top-left corner.
    logits_ref[...] = jnp.zeros_like(logits_ref)
    scores_ref[...] = jnp.zeros_like(scores_ref)
    dec_ref[...] = jnp.zeros_like(dec_ref)
    logits_ref[0:B, 0:NC] = logits
    scores_ref[0:B, 0:NC] = scores
    dec_ref[0:B, 0:1] = dec


# ------------------------------ wrapper ---------------------------------------
def _full(shape):
    return pl.BlockSpec(shape, lambda i: (0,) * len(shape))


def _run_fused(x, wconv, bconv, wfc, bfc):
    """x: wav [B, 1, T] -> (logits [B,NC], scores [B,NC], decisions [B])."""
    # im2col: stride == kernel, so frames are a pure reshape of the waveform.
    patches = x.reshape(B * TP, K).astype(jnp.float32)
    logits_pad, scores_pad, dec_pad = pl.pallas_call(
        _fused_kernel,
        out_shape=(
            jax.ShapeDtypeStruct((PAD_R, PAD_C), jnp.float32),
            jax.ShapeDtypeStruct((PAD_R, PAD_C), jnp.float32),
            jax.ShapeDtypeStruct((PAD_R, PAD_C), jnp.int32),
        ),
        grid=(1,),
        in_specs=[
            _full((B * TP, K)),
            _full((K, C)),
            _full((1, C)),
            _full((C, NC)),
            _full((1, NC)),
        ],
        out_specs=(
            _full((PAD_R, PAD_C)),
            _full((PAD_R, PAD_C)),
            _full((PAD_R, PAD_C)),
        ),
        compiler_params=pltpu.CompilerParams(vmem_limit_bytes=4 * 1024 * 1024),
        cost_estimate=pl.CostEstimate(
            flops=2 * B * TP * K * C + B * TP * C + 2 * B * C * NC,
            transcendentals=B * NC + B,
            bytes_accessed=4 * (B * TP * K + K * C + C + C * NC + NC
                                + 3 * PAD_R * PAD_C)),
    )(patches, wconv, bconv, wfc, bfc)
    logits = logits_pad[:B, :NC]
    scores = scores_pad[:B, :NC]
    decisions = dec_pad[:B, 0]
    return logits, scores, decisions


_run_fused_jit = jax.jit(_run_fused)


class DefendedModel:
    """JAX/Pallas counterpart of the PyTorch `defended_model` wrapper."""

    def __init__(self, params, threshold=THRESHOLD, defense=None):
        self.params = params
        self.threshold = threshold
        self.defense = defense

    def process_sequential(self, x):
        return x

    def embedding(self, x):
        return x

    def _run(self, x):
        return _run_fused_jit(x, *self.params)

    def forward(self, x):
        logits, _, _ = self._run(x)
        return logits

    def score(self, x):
        _, scores, _ = self._run(x)
        return scores

    def make_decision(self, x, enroll_embs=None):
        _, scores, decisions = self._run(x)
        return decisions, scores


def make_params():
    key = jax.random.PRNGKey(0)
    k1, k2, k3, k4 = jax.random.split(key, 4)
    wconv = jax.random.normal(k1, (K, C), jnp.float32) * 0.1
    bconv = jax.random.normal(k2, (1, C), jnp.float32) * 0.01
    wfc = jax.random.normal(k3, (C, NC), jnp.float32) * 0.1
    bfc = jax.random.normal(k4, (1, NC), jnp.float32) * 0.01
    return wconv, bconv, wfc, bfc


if __name__ == "__main__":
    params = make_params()
    model = DefendedModel(params)

    x = jax.random.normal(jax.random.PRNGKey(0), (B, 1, T), jnp.float32)

    logits = model.forward(x)          # == base_model(x)
    scores = model.score(x)            # softmax(logits)
    decisions, scores2 = model.make_decision(x)

    jax.block_until_ready((logits, scores, decisions, scores2))

    assert logits.shape == (B, NC)
    assert scores.shape == (B, NC)
    assert decisions.shape == (B,)
    print("KERNEL_OK")
</pallas_src>

<mosaic_0001>
module attributes {stable_mosaic.version = 11 : i64} {
  func.func @_fused_kernel(%arg0: i32, %arg1: memref<256x8xf32, #tpu.memory_space<vmem>>, %arg2: memref<8x32xf32, #tpu.memory_space<vmem>>, %arg3: memref<1x32xf32, #tpu.memory_space<vmem>>, %arg4: memref<32x10xf32, #tpu.memory_space<vmem>>, %arg5: memref<1x10xf32, #tpu.memory_space<vmem>>, %arg6: memref<8x128xf32, #tpu.memory_space<vmem>>, %arg7: memref<8x128xf32, #tpu.memory_space<vmem>>, %arg8: memref<8x128xi32, #tpu.memory_space<vmem>>) attributes {dimension_semantics = [#tpu.dimension_semantics<arbitrary>], iteration_bounds = array<i64: 1>, scalar_prefetch = 0 : i64, scratch_operands = 0 : i64, tpu.core_type = #tpu.core_type<tc>, window_params = [{pipeline_mode = #tpu.pipeline_mode<synchronous>, transform_indices = @transform_0, window_bounds = array<i64: 256, 8>}, {pipeline_mode = #tpu.pipeline_mode<synchronous>, transform_indices = @transform_1, window_bounds = array<i64: 8, 32>}, {pipeline_mode = #tpu.pipeline_mode<synchronous>, transform_indices = @transform_2, window_bounds = array<i64: 1, 32>}, {pipeline_mode = #tpu.pipeline_mode<synchronous>, transform_indices = @transform_3, window_bounds = array<i64: 32, 10>}, {pipeline_mode = #tpu.pipeline_mode<synchronous>, transform_indices = @transform_4, window_bounds = array<i64: 1, 10>}, {pipeline_mode = #tpu.pipeline_mode<synchronous>, transform_indices = @transform_5, window_bounds = array<i64: 8, 128>}, {pipeline_mode = #tpu.pipeline_mode<synchronous>, transform_indices = @transform_6, window_bounds = array<i64: 8, 128>}, {pipeline_mode = #tpu.pipeline_mode<synchronous>, transform_indices = @transform_7, window_bounds = array<i64: 8, 128>}]} {
    %c0 = arith.constant 0 : index
    %c0_0 = arith.constant 0 : index
    %0 = vector.load %arg1[%c0, %c0_0] : memref<256x8xf32, #tpu.memory_space<vmem>>, vector<256x8xf32>
    %cst = arith.constant 0.000000e+00 : f32
    %1 = vector.broadcast %cst : f32 to vector<256x32xf32>
    %c0_1 = arith.constant 0 : index
    %c0_2 = arith.constant 0 : index
    %2 = vector.load %arg3[%c0_1, %c0_2] : memref<1x32xf32, #tpu.memory_space<vmem>>, vector<1x32xf32>
    %3 = vector.broadcast %2 : vector<1x32xf32> to vector<256x32xf32>
    %4 = arith.addf %1, %3 : vector<256x32xf32>
    %5 = vector.extract_strided_slice %0 {offsets = [0, 0], sizes = [256, 1], strides = [1, 1]} : vector<256x8xf32> to vector<256x1xf32>
    %c0_3 = arith.constant 0 : index
    %c0_4 = arith.constant 0 : index
    %6 = vector.load %arg2[%c0_3, %c0_4] : memref<8x32xf32, #tpu.memory_space<vmem>>, vector<1x32xf32>
    %7 = vector.broadcast %5 : vector<256x1xf32> to vector<256x32xf32>
    %8 = vector.broadcast %6 : vector<1x32xf32> to vector<256x32xf32>
    %9 = arith.mulf %7, %8 : vector<256x32xf32>
    %10 = arith.addf %4, %9 : vector<256x32xf32>
    %11 = vector.extract_strided_slice %0 {offsets = [0, 1], sizes = [256, 1], strides = [1, 1]} : vector<256x8xf32> to vector<256x1xf32>
    %c1 = arith.constant 1 : index
    %c0_5 = arith.constant 0 : index
    %12 = vector.load %arg2[%c1, %c0_5] : memref<8x32xf32, #tpu.memory_space<vmem>>, vector<1x32xf32>
    %13 = vector.broadcast %11 : vector<256x1xf32> to vector<256x32xf32>
    %14 = vector.broadcast %12 : vector<1x32xf32> to vector<256x32xf32>
    %15 = arith.mulf %13, %14 : vector<256x32xf32>
    %16 = arith.addf %10, %15 : vector<256x32xf32>
    %17 = vector.extract_strided_slice %0 {offsets = [0, 2], sizes = [256, 1], strides = [1, 1]} : vector<256x8xf32> to vector<256x1xf32>
    %c2 = arith.constant 2 : index
    %c0_6 = arith.constant 0 : index
    %18 = vector.load %arg2[%c2, %c0_6] : memref<8x32xf32, #tpu.memory_space<vmem>>, vector<1x32xf32>
    %19 = vector.broadcast %17 : vector<256x1xf32> to vector<256x32xf32>
    %20 = vector.broadcast %18 : vector<1x32xf32> to vector<256x32xf32>
    %21 = arith.mulf %19, %20 : vector<256x32xf32>
    %22 = arith.addf %16, %21 : vector<256x32xf32>
    %23 = vector.extract_strided_slice %0 {offsets = [0, 3], sizes = [256, 1], strides = [1, 1]} : vector<256x8xf32> to vector<256x1xf32>
    %c3 = arith.constant 3 : index
    %c0_7 = arith.constant 0 : index
    %24 = vector.load %arg2[%c3, %c0_7] : memref<8x32xf32, #tpu.memory_space<vmem>>, vector<1x32xf32>
    %25 = vector.broadcast %23 : vector<256x1xf32> to vector<256x32xf32>
    %26 = vector.broadcast %24 : vector<1x32xf32> to vector<256x32xf32>
    %27 = arith.mulf %25, %26 : vector<256x32xf32>
    %28 = arith.addf %22, %27 : vector<256x32xf32>
    %29 = vector.extract_strided_slice %0 {offsets = [0, 4], sizes = [256, 1], strides = [1, 1]} : vector<256x8xf32> to vector<256x1xf32>
    %c4 = arith.constant 4 : index
    %c0_8 = arith.constant 0 : index
    %30 = vector.load %arg2[%c4, %c0_8] : memref<8x32xf32, #tpu.memory_space<vmem>>, vector<1x32xf32>
    %31 = vector.broadcast %29 : vector<256x1xf32> to vector<256x32xf32>
    %32 = vector.broadcast %30 : vector<1x32xf32> to vector<256x32xf32>
    %33 = arith.mulf %31, %32 : vector<256x32xf32>
    %34 = arith.addf %28, %33 : vector<256x32xf32>
    %35 = vector.extract_strided_slice %0 {offsets = [0, 5], sizes = [256, 1], strides = [1, 1]} : vector<256x8xf32> to vector<256x1xf32>
    %c5 = arith.constant 5 : index
    %c0_9 = arith.constant 0 : index
    %36 = vector.load %arg2[%c5, %c0_9] : memref<8x32xf32, #tpu.memory_space<vmem>>, vector<1x32xf32>
    %37 = vector.broadcast %35 : vector<256x1xf32> to vector<256x32xf32>
    %38 = vector.broadcast %36 : vector<1x32xf32> to vector<256x32xf32>
    %39 = arith.mulf %37, %38 : vector<256x32xf32>
    %40 = arith.addf %34, %39 : vector<256x32xf32>
    %41 = vector.extract_strided_slice %0 {offsets = [0, 6], sizes = [256, 1], strides = [1, 1]} : vector<256x8xf32> to vector<256x1xf32>
    %c6 = arith.constant 6 : index
    %c0_10 = arith.constant 0 : index
    %42 = vector.load %arg2[%c6, %c0_10] : memref<8x32xf32, #tpu.memory_space<vmem>>, vector<1x32xf32>
    %43 = vector.broadcast %41 : vector<256x1xf32> to vector<256x32xf32>
    %44 = vector.broadcast %42 : vector<1x32xf32> to vector<256x32xf32>
    %45 = arith.mulf %43, %44 : vector<256x32xf32>
    %46 = arith.addf %40, %45 : vector<256x32xf32>
    %47 = vector.extract_strided_slice %0 {offsets = [0, 7], sizes = [256, 1], strides = [1, 1]} : vector<256x8xf32> to vector<256x1xf32>
    %c7 = arith.constant 7 : index
    %c0_11 = arith.constant 0 : index
    %48 = vector.load %arg2[%c7, %c0_11] : memref<8x32xf32, #tpu.memory_space<vmem>>, vector<1x32xf32>
    %49 = vector.broadcast %47 : vector<256x1xf32> to vector<256x32xf32>
    %50 = vector.broadcast %48 : vector<1x32xf32> to vector<256x32xf32>
    %51 = arith.mulf %49, %50 : vector<256x32xf32>
    %52 = arith.addf %46, %51 : vector<256x32xf32>
    %cst_12 = arith.constant 0.000000e+00 : f32
    %53 = vector.broadcast %cst_12 : f32 to vector<256x32xf32>
    %54 = arith.maximumf %52, %53 : vector<256x32xf32>
    %55 = vector.shape_cast %54 : vector<256x32xf32> to vector<2x128x32xf32>
    %cst_13 = arith.constant dense<0.000000e+00> : vector<2x32xf32>
    %56 = vector.multi_reduction <add>, %55, %cst_13 [1] : vector<2x128x32xf32> to vector<2x32xf32>
    %cst_14 = arith.constant 7.812500e-03 : f32
    %57 = vector.broadcast %cst_14 : f32 to vector<2x32xf32>
    %58 = arith.mulf %56, %57 : vector<2x32xf32>
    %c0_15 = arith.constant 0 : index
    %c0_16 = arith.constant 0 : index
    %59 = vector.load %arg4[%c0_15, %c0_16] : memref<32x10xf32, #tpu.memory_space<vmem>>, vector<32x10xf32>
    %cst_17 = arith.constant dense<0.000000e+00> : vector<2x10xf32>
    %60 = tpu.matmul %58, %59, %cst_17 {dimension_numbers = #tpu.dot_dimension_numbers<[1], [0], [0], [1], [0, 0, 1, 1], [], []>} : vector<2x32xf32>, vector<32x10xf32>, vector<2x10xf32> -> vector<2x10xf32>
    %c0_18 = arith.constant 0 : index
    %c0_19 = arith.constant 0 : index
    %61 = vector.load %arg5[%c0_18, %c0_19] : memref<1x10xf32, #tpu.memory_space<vmem>>, vector<1x10xf32>
    %62 = vector.broadcast %61 : vector<1x10xf32> to vector<2x10xf32>
    %63 = arith.addf %60, %62 : vector<2x10xf32>
    %cst_20 = arith.constant dense<0xFF800000> : vector<2xf32>
    %64 = vector.multi_reduction <maximumf>, %63, %cst_20 [1] : vector<2x10xf32> to vector<2xf32>
    %65 = vector.shape_cast %64 : vector<2xf32> to vector<2x1xf32>
    %66 = vector.broadcast %65 : vector<2x1xf32> to vector<2x10xf32>
    %67 = arith.subf %63, %66 : vector<2x10xf32>
    %68 = math.exp %67 : vector<2x10xf32>
    %cst_21 = arith.constant dense<0.000000e+00> : vector<2xf32>
    %69 = vector.multi_reduction <add>, %68, %cst_21 [1] : vector<2x10xf32> to vector<2xf32>
    %70 = vector.shape_cast %69 : vector<2xf32> to vector<2x1xf32>
    %71 = tpu.reciprocal %70 {approx = true} : vector<2x1xf32> -> vector<2x1xf32>
    %72 = vector.broadcast %71 : vector<2x1xf32> to vector<2x10xf32>
    %73 = arith.mulf %68, %72 : vector<2x10xf32>
    %74 = tpu.iota {dimensions = array<i32: 1>} : vector<2x10xi32>
    %75 = vector.broadcast %65 : vector<2x1xf32> to vector<2x10xf32>
    %76 = arith.cmpf oeq, %63, %75 : vector<2x10xf32>
    %c10_i32 = arith.constant 10 : i32
    %77 = vector.broadcast %c10_i32 : i32 to vector<2x10xi32>
    %78 = arith.select %76, %74, %77 : vector<2x10xi1>, vector<2x10xi32>
    %cst_22 = arith.constant dense<2147483647> : vector<2xi32>
    %79 = vector.multi_reduction <minsi>, %78, %cst_22 [1] : vector<2x10xi32> to vector<2xi32>
    %80 = vector.shape_cast %79 : vector<2xi32> to vector<2x1xi32>
    %cst_23 = arith.constant dense<0xFF800000> : vector<2xf32>
    %81 = vector.multi_reduction <maximumf>, %73, %cst_23 [1] : vector<2x10xf32> to vector<2xf32>
    %82 = vector.shape_cast %81 : vector<2xf32> to vector<2x1xf32>
    %cst_24 = arith.constant 2.500000e-01 : f32
    %83 = vector.broadcast %cst_24 : f32 to vector<2x1xf32>
    %84 = arith.cmpf ogt, %82, %83 : vector<2x1xf32>
    %c-1_i32 = arith.constant -1 : i32
    %85 = vector.broadcast %c-1_i32 : i32 to vector<2x1xi32>
    %86 = arith.select %84, %80, %85 : vector<2x1xi1>, vector<2x1xi32>
    %cst_25 = arith.constant 0.000000e+00 : f32
    %87 = vector.broadcast %cst_25 : f32 to vector<8x128xf32>
    %c0_26 = arith.constant 0 : index
    %c0_27 = arith.constant 0 : index
    %88 = vector.load %arg6[%c0_26, %c0_27] : memref<8x128xf32, #tpu.memory_space<vmem>>, vector<8x128xf32>
    tpu.vector_store %arg6[%c0_26, %c0_27], %87 {strides = array<i32>} : memref<8x128xf32, #tpu.memory_space<vmem>>, vector<8x128xf32>,
    %cst_28 = arith.constant 0.000000e+00 : f32
    %89 = vector.broadcast %cst_28 : f32 to vector<8x128xf32>
    %c0_29 = arith.constant 0 : index
    %c0_30 = arith.constant 0 : index
    %90 = vector.load %arg7[%c0_29, %c0_30] : memref<8x128xf32, #tpu.memory_space<vmem>>, vector<8x128xf32>
    tpu.vector_store %arg7[%c0_29, %c0_30], %89 {strides = array<i32>} : memref<8x128xf32, #tpu.memory_space<vmem>>, vector<8x128xf32>,
    %c0_i32 = arith.constant 0 : i32
    %91 = vector.broadcast %c0_i32 : i32 to vector<8x128xi32>
    %c0_31 = arith.constant 0 : index
    %c0_32 = arith.constant 0 : index
    %92 = vector.load %arg8[%c0_31, %c0_32] : memref<8x128xi32, #tpu.memory_space<vmem>>, vector<8x128xi32>
    tpu.vector_store %arg8[%c0_31, %c0_32], %91 {strides = array<i32>} : memref<8x128xi32, #tpu.memory_space<vmem>>, vector<8x128xi32>,
    %c0_33 = arith.constant 0 : index
    %c0_34 = arith.constant 0 : index
    %93 = vector.load %arg6[%c0_33, %c0_34] : memref<8x128xf32, #tpu.memory_space<vmem>>, vector<2x10xf32>
    tpu.vector_store %arg6[%c0_33, %c0_34], %63 {strides = array<i32>} : memref<8x128xf32, #tpu.memory_space<vmem>>, vector<2x10xf32>,
    %c0_35 = arith.constant 0 : index
    %c0_36 = arith.constant 0 : index
    %94 = vector.load %arg7[%c0_35, %c0_36] : memref<8x128xf32, #tpu.memory_space<vmem>>, vector<2x10xf32>
    tpu.vector_store %arg7[%c0_35, %c0_36], %73 {strides = array<i32>} : memref<8x128xf32, #tpu.memory_space<vmem>>, vector<2x10xf32>,
    %c0_37 = arith.constant 0 : index
    %c0_38 = arith.constant 0 : index
    %95 = vector.load %arg8[%c0_37, %c0_38] : memref<8x128xi32, #tpu.memory_space<vmem>>, vector<2x1xi32>
    tpu.vector_store %arg8[%c0_37, %c0_38], %86 {strides = array<i32>} : memref<8x128xi32, #tpu.memory_space<vmem>>, vector<2x1xi32>,
    return
  }
  func.func @transform_0(%arg0: i32) -> (i32, i32) {
    %c0_i32 = arith.constant 0 : i32
    %c0_i32_0 = arith.constant 0 : i32
    %c0_i32_1 = arith.constant 0 : i32
    return %c0_i32, %c0_i32_0 : i32, i32
  }
  func.func @transform_1(%arg0: i32) -> (i32, i32) {
    %c0_i32 = arith.constant 0 : i32
    %c0_i32_0 = arith.constant 0 : i32
    %c0_i32_1 = arith.constant 0 : i32
    return %c0_i32, %c0_i32_0 : i32, i32
  }
  func.func @transform_2(%arg0: i32) -> (i32, i32) {
    %c0_i32 = arith.constant 0 : i32
    %c0_i32_0 = arith.constant 0 : i32
    %c0_i32_1 = arith.constant 0 : i32
    return %c0_i32, %c0_i32_0 : i32, i32
  }
  func.func @transform_3(%arg0: i32) -> (i32, i32) {
    %c0_i32 = arith.constant 0 : i32
    %c0_i32_0 = arith.constant 0 : i32
    %c0_i32_1 = arith.constant 0 : i32
    return %c0_i32, %c0_i32_0 : i32, i32
  }
  func.func @transform_4(%arg0: i32) -> (i32, i32) {
    %c0_i32 = arith.constant 0 : i32
    %c0_i32_0 = arith.constant 0 : i32
    %c0_i32_1 = arith.constant 0 : i32
    return %c0_i32, %c0_i32_0 : i32, i32
  }
  func.func @transform_5(%arg0: i32) -> (i32, i32) {
    %c0_i32 = arith.constant 0 : i32
    %c0_i32_0 = arith.constant 0 : i32
    %c0_i32_1 = arith.constant 0 : i32
    return %c0_i32, %c0_i32_0 : i32, i32
  }
  func.func @transform_6(%arg0: i32) -> (i32, i32) {
    %c0_i32 = arith.constant 0 : i32
    %c0_i32_0 = arith.constant 0 : i32
    %c0_i32_1 = arith.constant 0 : i32
    return %c0_i32, %c0_i32_0 : i32, i32
  }
  func.func @transform_7(%arg0: i32) -> (i32, i32) {
    %c0_i32 = arith.constant 0 : i32
    %c0_i32_0 = arith.constant 0 : i32
    %c0_i32_1 = arith.constant 0 : i32
    return %c0_i32, %c0_i32_0 : i32, i32
  }
}

</mosaic_0001>

<bundles_post_ra>
// kernel: _run_fused.1
= control target key start
LH: loop header
LB: loop body
LE: loop exit
PB: predicated region body
PF: predicated region fallthrough
CT: control target
= control target key end

     0   :  { %v2078_v0 = vmov 0   ;;  %v2079_v33 = vmov 1   ;;  %v2080_v36 = vmov 2   ;;  %vm1703_vm0 = vcmask 261120   ;;  %s3795_s7 = inlined_call_operand.vmem [shape: s32[8,128], index: 7, kind: output, shape index: {2}]   ;;  %s3796_s0 = inlined_call_operand.vmem [shape: f32[256,8], index: 0, kind: input, shape index: {}]   ;;  %s3797_s1 = inlined_call_operand.vmem [shape: f32[8,32], index: 1, kind: input, shape index: {}]   ;;  %s3798_s2 = inlined_call_operand.vmem [shape: f32[1,32], index: 2, kind: input, shape index: {}]   ;;  %s3799_s3 = inlined_call_operand.vmem [shape: f32[32,10], index: 3, kind: input, shape index: {}]   ;;  %s3800_s5 = inlined_call_operand.vmem [shape: f32[8,128], index: 5, kind: output, shape index: {0}]   ;;  %s3801_s6 = inlined_call_operand.vmem [shape: f32[8,128], index: 6, kind: output, shape index: {1}]   ;;  %s3802_s4 = inlined_call_operand.vmem [shape: f32[1,10], index: 4, kind: input, shape index: {}]  }
   0x1   :  { %1967 = vset.pattern.permute.xlu1 %v2078_v0  ;;  %1905 = vst [vmem:[%s3795_s7] sm:$0xff] %v2078_v0  ;;  %1966 = vset.pattern.permute.xlu0 %v2078_v0  ;;  %v2135_v1 = vld [vmem:[%s3796_s0 + $0x10] sm:$0xff]  ;;  %v2140_v2 = vld [vmem:[%s3796_s0] sm:$0xff]  ;;  %v2147_v3 = vld [vmem:[%s3796_s0 + $0x18] sm:$0xff]  ;;  %vm2087_vm1 = vmmov 0   ;;  %vm1793_vm2 = vcmask 1041409   ;;  %vm1867_vm3 = vcmask 74752  }
   0x2   :  { %76 = vperm.xlu1 %1967, %v2135_v1   ;;  %66 = vperm.xlu0 %1966, %v2140_v2   ;;  %v2152_v4 = vld [vmem:[%s3796_s0 + $0x8] sm:$0xff]  ;;  %v2164_v6 = vld [vmem:[%s3796_s0 + $0x20] sm:$0xff]  ;;  %v2171_v7 = vld [vmem:[%s3796_s0 + $0x38] sm:$0xff]  ;;  %vm1908_vm6 = vcmask 1024  }
   0x3   :  { %v2159_v5 = vld [vmem:[%s3796_s0 + $0x28] sm:$0xff]  ;;  %v2176_v8 = vld [vmem:[%s3796_s0 + $0x30] sm:$0xff]  ;;  %v2188_v10 = vld [vmem:[%s3796_s0 + $0x40] sm:$0xff] }
   0x4   :  { %v2183_v9 = vld [vmem:[%s3796_s0 + $0x48] sm:$0xff]  ;;  %v2195_v11 = vld [vmem:[%s3796_s0 + $0x58] sm:$0xff]  ;;  %v2200_v12 = vld [vmem:[%s3796_s0 + $0x50] sm:$0xff] }
   0x5   :  { %v2207_v13 = vld [vmem:[%s3796_s0 + $0x68] sm:$0xff]  ;;  %v2212_v14 = vld [vmem:[%s3796_s0 + $0x60] sm:$0xff]  ;;  %v2219_v15 = vld [vmem:[%s3796_s0 + $0x78] sm:$0xff] }
   0x6   :  { %81 = vperm.xlu1 %1967, %v2147_v3   ;;  %71 = vperm.xlu0 %1966, %v2152_v4   ;;  %v2224_v16 = vld [vmem:[%s3796_s0 + $0x70] sm:$0xff]  ;;  %v2231_v17 = vld [vmem:[%s3796_s0 + $0x88] sm:$0xff]  ;;  %v2236_v18 = vld [vmem:[%s3796_s0 + $0x80] sm:$0xff] }
   0x7   :  { %v2243_v19 = vld [vmem:[%s3796_s0 + $0x98] sm:$0xff]  ;;  %v2248_v20 = vld [vmem:[%s3796_s0 + $0x90] sm:$0xff]  ;;  %v2255_v21 = vld [vmem:[%s3796_s0 + $0xa8] sm:$0xff] }
   0x8   :  { %v2260_v22 = vld [vmem:[%s3796_s0 + $0xa0] sm:$0xff]  ;;  %v2267_v23 = vld [vmem:[%s3796_s0 + $0xb8] sm:$0xff]  ;;  %v2272_v24 = vld [vmem:[%s3796_s0 + $0xb0] sm:$0xff] }
   0x9   :  { %v2279_v25 = vld [vmem:[%s3796_s0 + $0xc8] sm:$0xff]  ;;  %v2284_v26 = vld [vmem:[%s3796_s0 + $0xc0] sm:$0xff]  ;;  %v2291_v27 = vld [vmem:[%s3796_s0 + $0xd8] sm:$0xff] }
   0xa   :  { %91 = vperm.xlu1 %1967, %v2159_v5   ;;  %86 = vperm.xlu0 %1966, %v2164_v6   ;;  %v2296_v28 = vld [vmem:[%s3796_s0 + $0xd0] sm:$0xff]  ;;  %v2303_v29 = vld [vmem:[%s3796_s0 + $0xe8] sm:$0xff]  ;;  %v2308_v30 = vld [vmem:[%s3796_s0 + $0xe0] sm:$0xff] }
   0xb   :  { %v2315_v31 = vld [vmem:[%s3796_s0 + $0xf8] sm:$0xff]  ;;  %v2320_v32 = vld [vmem:[%s3796_s0 + $0xf0] sm:$0xff] }
   0xe   :  { %101 = vperm.xlu1 %1967, %v2171_v7   ;;  %96 = vperm.xlu0 %1966, %v2176_v8  }
  0x12   :  { %111 = vperm.xlu1 %1967, %v2183_v9   ;;  %106 = vperm.xlu0 %1966, %v2188_v10  }
  0x16   :  { %121 = vperm.xlu1 %1967, %v2195_v11   ;;  %116 = vperm.xlu0 %1966, %v2200_v12  }
  0x1a   :  { %131 = vperm.xlu1 %1967, %v2207_v13   ;;  %126 = vperm.xlu0 %1966, %v2212_v14  }
  0x1e   :  { %141 = vperm.xlu1 %1967, %v2219_v15   ;;  %136 = vperm.xlu0 %1966, %v2224_v16  }
  0x22   :  { %151 = vperm.xlu1 %1967, %v2231_v17   ;;  %146 = vperm.xlu0 %1966, %v2236_v18  }
  0x26   :  { %161 = vperm.xlu1 %1967, %v2243_v19   ;;  %156 = vperm.xlu0 %1966, %v2248_v20  }
  0x2a   :  { %171 = vperm.xlu1 %1967, %v2255_v21   ;;  %166 = vperm.xlu0 %1966, %v2260_v22  }
  0x2e   :  { %181 = vperm.xlu1 %1967, %v2267_v23   ;;  %176 = vperm.xlu0 %1966, %v2272_v24  }
  0x32   :  { %191 = vperm.xlu1 %1967, %v2279_v25   ;;  %186 = vperm.xlu0 %1966, %v2284_v26  }
  0x36   :  { %201 = vperm.xlu1 %1967, %v2291_v27   ;;  %196 = vperm.xlu0 %1966, %v2296_v28  }
  0x3a   :  { %211 = vperm.xlu1 %1967, %v2303_v29   ;;  %206 = vperm.xlu0 %1966, %v2308_v30  }
  0x3e   :  { %221 = vperm.xlu1 %1967, %v2315_v31   ;;  %216 = vperm.xlu0 %1966, %v2320_v32  }
  0x42   :  { %1969 = vset.pattern.permute.xlu1 %v2079_v33  ;;  %1968 = vset.pattern.permute.xlu0 %v2079_v33 }
  0x43   :  { %298 = vperm.xlu1 %1969, %v2152_v4   ;;  %294 = vperm.xlu0 %1968, %v2140_v2  }
  0x47   :  { %302 = vperm.xlu1 %1969, %v2135_v1   ;;  %306 = vperm.xlu0 %1968, %v2147_v3  }
  0x4b   :  { %310 = vperm.xlu1 %1969, %v2164_v6   ;;  %314 = vperm.xlu0 %1968, %v2159_v5  }
  0x4f   :  { %318 = vperm.xlu1 %1969, %v2176_v8   ;;  %322 = vperm.xlu0 %1968, %v2171_v7  }
  0x53   :  { %326 = vperm.xlu1 %1969, %v2188_v10   ;;  %330 = vperm.xlu0 %1968, %v2183_v9  }
  0x57   :  { %334 = vperm.xlu1 %1969, %v2200_v12   ;;  %338 = vperm.xlu0 %1968, %v2195_v11  }
  0x5b   :  { %342 = vperm.xlu1 %1969, %v2212_v14   ;;  %346 = vperm.xlu0 %1968, %v2207_v13  }
  0x5f   :  { %350 = vperm.xlu1 %1969, %v2224_v16   ;;  %354 = vperm.xlu0 %1968, %v2219_v15  }
  0x63   :  { %358 = vperm.xlu1 %1969, %v2236_v18   ;;  %362 = vperm.xlu0 %1968, %v2231_v17  }
  0x67   :  { %366 = vperm.xlu1 %1969, %v2248_v20   ;;  %370 = vperm.xlu0 %1968, %v2243_v19  }
  0x6b   :  { %374 = vperm.xlu1 %1969, %v2260_v22   ;;  %378 = vperm.xlu0 %1968, %v2255_v21  }
  0x6f   :  { %382 = vperm.xlu1 %1969, %v2272_v24   ;;  %386 = vperm.xlu0 %1968, %v2267_v23  }
  0x73   :  { %390 = vperm.xlu1 %1969, %v2284_v26   ;;  %394 = vperm.xlu0 %1968, %v2279_v25  }
  0x77   :  { %398 = vperm.xlu1 %1969, %v2296_v28   ;;  %402 = vperm.xlu0 %1968, %v2291_v27  }
  0x7b   :  { %406 = vperm.xlu1 %1969, %v2308_v30   ;;  %410 = vperm.xlu0 %1968, %v2303_v29  }
  0x7f   :  { %414 = vperm.xlu1 %1969, %v2320_v32   ;;  %418 = vperm.xlu0 %1968, %v2315_v31  }
  0x81   :  { %v2356_v34 = vpop.permute.xlu1 %76  ;;  %v2358_v35 = vpop.permute.xlu0 %66 }
  0x83   :  { %1970 = vset.pattern.permute.xlu1 %v2080_v36  ;;  %1971 = vset.pattern.permute.xlu0 %v2080_v36 }
  0x84   :  { %491 = vperm.xlu1 %1970, %v2140_v2   ;;  %495 = vperm.xlu0 %1971, %v2152_v4  }
  0x85   :  { %v2362_v37 = vpop.permute.xlu1 %81  ;;  %v2364_v38 = vpop.permute.xlu0 %71 }
  0x88   :  { %499 = vperm.xlu1 %1970, %v2135_v1   ;;  %507 = vperm.xlu0 %1971, %v2164_v6  }
  0x89   :  { %v2368_v39 = vpop.permute.xlu1 %91  ;;  %v2370_v40 = vpop.permute.xlu0 %86 }
  0x8a   :  { %3816 = vst [vmem:[#allocation2_spill] sm:$0xff] %v2368_v39 }
  0x8c   :  { %503 = vperm.xlu1 %1970, %v2147_v3   ;;  %515 = vperm.xlu0 %1971, %v2176_v8  }
  0x8d   :  { %v2374_v41 = vpop.permute.xlu1 %101  ;;  %v2376_v42 = vpop.permute.xlu0 %96 }
  0x8e   :  { %3817 = vst [vmem:[#allocation3_spill] sm:$0xff] %v2374_v41  ;;  %3818 = vst [vmem:[#allocation4_spill] sm:$0xff] %v2376_v42  ;;  %v3867_v42 = vmov 4  }
  0x90   :  { %511 = vperm.xlu1 %1970, %v2159_v5   ;;  %523 = vperm.xlu0 %1971, %v2188_v10  }
  0x91   :  { %v2380_v43 = vpop.permute.xlu1 %111  ;;  %v2382_v44 = vpop.permute.xlu0 %106 }
  0x92   :  { %3819 = vst [vmem:[#allocation5_spill] sm:$0xff] %v2380_v43  ;;  %3820 = vst [vmem:[#allocation6_spill] sm:$0xff] %v2382_v44 }
  0x94   :  { %519 = vperm.xlu1 %1970, %v2171_v7   ;;  %531 = vperm.xlu0 %1971, %v2200_v12  }
  0x95   :  { %v2386_v45 = vpop.permute.xlu1 %121  ;;  %v2388_v46 = vpop.permute.xlu0 %116 }
  0x96   :  { %3821 = vst [vmem:[#allocation7_spill] sm:$0xff] %v2386_v45  ;;  %3822 = vst [vmem:[#allocation8_spill] sm:$0xff] %v2388_v46 }
  0x98   :  { %527 = vperm.xlu1 %1970, %v2183_v9   ;;  %539 = vperm.xlu0 %1971, %v2212_v14  }
  0x99   :  { %v2392_v47 = vpop.permute.xlu1 %131  ;;  %v2394_v48 = vpop.permute.xlu0 %126 }
  0x9a   :  { %3823 = vst [vmem:[#allocation9_spill] sm:$0xff] %v2392_v47  ;;  %3824 = vst [vmem:[#allocation10_spill] sm:$0xff] %v2394_v48 }
  0x9c   :  { %535 = vperm.xlu1 %1970, %v2195_v11   ;;  %547 = vperm.xlu0 %1971, %v2224_v16  }
  0x9d   :  { %v2398_v49 = vpop.permute.xlu1 %141  ;;  %v2400_v50 = vpop.permute.xlu0 %136 }
  0x9e   :  { %3825 = vst [vmem:[#allocation11_spill] sm:$0xff] %v2398_v49  ;;  %3826 = vst [vmem:[#allocation12_spill] sm:$0xff] %v2400_v50  ;;  %v3803_v49 = vmov 3  }
  0xa0   :  { %543 = vperm.xlu1 %1970, %v2207_v13   ;;  %555 = vperm.xlu0 %1971, %v2236_v18  }
  0xa1   :  { %v2404_v51 = vpop.permute.xlu1 %151  ;;  %v2406_v52 = vpop.permute.xlu0 %146 }
  0xa4   :  { %551 = vperm.xlu1 %1970, %v2219_v15   ;;  %563 = vperm.xlu0 %1971, %v2248_v20  }
  0xa5   :  { %v2410_v53 = vpop.permute.xlu1 %161  ;;  %v2412_v54 = vpop.permute.xlu0 %156 }
  0xa8   :  { %559 = vperm.xlu1 %1970, %v2231_v17   ;;  %571 = vperm.xlu0 %1971, %v2260_v22  }
  0xa9   :  { %v2416_v55 = vpop.permute.xlu1 %171  ;;  %v2418_v56 = vpop.permute.xlu0 %166 }
  0xaa   :  { %3827 = vst [vmem:[#allocation13_spill] sm:$0xff] %v2416_v55  ;;  %3828 = vst [vmem:[#allocation14_spill] sm:$0xff] %v2418_v56 }
  0xac   :  { %567 = vperm.xlu1 %1970, %v2243_v19   ;;  %579 = vperm.xlu0 %1971, %v2272_v24  }
  0xad   :  { %v2422_v57 = vpop.permute.xlu1 %181  ;;  %v2424_v58 = vpop.permute.xlu0 %176 }
  0xae   :  { %3829 = vst [vmem:[#allocation15_spill] sm:$0xff] %v2422_v57  ;;  %3830 = vst [vmem:[#allocation16_spill] sm:$0xff] %v2424_v58  ;;  %v3807_v57 = vmov 4  }
  0xb0   :  { %575 = vperm.xlu1 %1970, %v2255_v21   ;;  %587 = vperm.xlu0 %1971, %v2284_v26  }
  0xb1   :  { %v2428_v59 = vpop.permute.xlu1 %191  ;;  %v2430_v60 = vpop.permute.xlu0 %186 }
  0xb2   :  { %3831 = vst [vmem:[#allocation17_spill] sm:$0xff] %v2428_v59  ;;  %3832 = vst [vmem:[#allocation18_spill] sm:$0xff] %v2430_v60 }
  0xb4   :  { %583 = vperm.xlu1 %1970, %v2267_v23   ;;  %595 = vperm.xlu0 %1971, %v2296_v28  }
  0xb5   :  { %v2434_v61 = vpop.permute.xlu1 %201  ;;  %v2436_v62 = vpop.permute.xlu0 %196 }
  0xb6   :  { %3833 = vst [vmem:[#allocation19_spill] sm:$0xff] %v2434_v61  ;;  %3834 = vst [vmem:[#allocation20_spill] sm:$0xff] %v2436_v62 }
  0xb8   :  { %591 = vperm.xlu1 %1970, %v2279_v25   ;;  %603 = vperm.xlu0 %1971, %v2308_v30  }
  0xb9   :  { %v2440_v63 = vpop.permute.xlu1 %211  ;;  %v2442_v0 = vpop.permute.xlu0 %206 }
  0xba   :  { %3835 = vst [vmem:[#allocation21_spill] sm:$0xff] %v2440_v63  ;;  %3836 = vst [vmem:[#allocation22_spill] sm:$0xff] %v2442_v0 }
  0xbc   :  { %599 = vperm.xlu1 %1970, %v2291_v27   ;;  %611 = vperm.xlu0 %1971, %v2320_v32  }
  0xbd   :  { %v2446_v33 = vpop.permute.xlu1 %221  ;;  %v2448_v36 = vpop.permute.xlu0 %216 }
  0xbe   :  { %3837 = vst [vmem:[#allocation23_spill] sm:$0xff] %v2446_v33  ;;  %3838 = vst [vmem:[#allocation24_spill] sm:$0xff] %v2448_v36 }
  0xc0   :  { %607 = vperm.xlu1 %1970, %v2303_v29   ;;  %1972 = vset.pattern.permute.xlu0 %v3803_v49 }
  0xc1   :  { %688 = vperm.xlu0 %1972, %v2140_v2  }
  0xc2   :  { %v2453_v47 = vpop.permute.xlu1 %298  ;;  %v2455_v50 = vpop.permute.xlu0 %294 }
  0xc4   :  { %615 = vperm.xlu1 %1970, %v2315_v31  }
  0xc5   :  { %700 = vperm.xlu0 %1972, %v2147_v3  }
  0xc6   :  { %v2459_v32 = vpop.permute.xlu1 %302  ;;  %v2461_v33 = vpop.permute.xlu0 %306 }
  0xc8   :  { %1973 = vset.pattern.permute.xlu1 %v3803_v49 }
  0xc9   :  { %692 = vperm.xlu1 %1973, %v2152_v4   ;;  %708 = vperm.xlu0 %1972, %v2159_v5  }
  0xca   :  { %v2466_v36 = vpop.permute.xlu1 %310  ;;  %v2468_v48 = vpop.permute.xlu0 %314 }
  0xcb   :  { %3839 = vst [vmem:[#allocation25_spill] sm:$0xff] %v2468_v48 }
  0xcd   :  { %696 = vperm.xlu1 %1973, %v2135_v1   ;;  %716 = vperm.xlu0 %1972, %v2171_v7  }
  0xce   :  { %v2472_v63 = vpop.permute.xlu1 %318  ;;  %v2474_v45 = vpop.permute.xlu0 %322 }
  0xcf   :  { %3840 = vst [vmem:[#allocation26_spill] sm:$0xff] %v2472_v63  ;;  %3841 = vst [vmem:[#allocation27_spill] sm:$0xff] %v2474_v45 }
  0xd1   :  { %704 = vperm.xlu1 %1973, %v2164_v6   ;;  %724 = vperm.xlu0 %1972, %v2183_v9  }
  0xd2   :  { %v2478_v49 = vpop.permute.xlu1 %326  ;;  %v2480_v0 = vpop.permute.xlu0 %330 }
  0xd3   :  { %3842 = vst [vmem:[#allocation28_spill] sm:$0xff] %v2478_v49  ;;  %3843 = vst [vmem:[#allocation29_spill] sm:$0xff] %v2480_v0 }
  0xd5   :  { %712 = vperm.xlu1 %1973, %v2176_v8   ;;  %732 = vperm.xlu0 %1972, %v2195_v11  }
  0xd6   :  { %v2484_v59 = vpop.permute.xlu1 %334  ;;  %v2486_v46 = vpop.permute.xlu0 %338 }
  0xd7   :  { %3844 = vst [vmem:[#allocation30_spill] sm:$0xff] %v2484_v59  ;;  %3845 = vst [vmem:[#allocation31_spill] sm:$0xff] %v2486_v46 }
  0xd9   :  { %720 = vperm.xlu1 %1973, %v2188_v10   ;;  %740 = vperm.xlu0 %1972, %v2207_v13  }
  0xda   :  { %v2490_v61 = vpop.permute.xlu1 %342  ;;  %v2492_v60 = vpop.permute.xlu0 %346 }
  0xdb   :  { %3846 = vst [vmem:[#allocation32_spill] sm:$0xff] %v2490_v61  ;;  %3847 = vst [vmem:[#allocation33_spill] sm:$0xff] %v2492_v60 }
  0xdd   :  { %728 = vperm.xlu1 %1973, %v2200_v12   ;;  %748 = vperm.xlu0 %1972, %v2219_v15  }
  0xde   :  { %v2496_v0 = vpop.permute.xlu1 %350  ;;  %v2498_v43 = vpop.permute.xlu0 %354 }
  0xdf   :  { %3848 = vst [vmem:[#allocation34_spill] sm:$0xff] %v2496_v0  ;;  %3849 = vst [vmem:[#allocation35_spill] sm:$0xff] %v2498_v43  ;;  %v3805_v0 = vmov 5  }
  0xe1   :  { %736 = vperm.xlu1 %1973, %v2212_v14   ;;  %756 = vperm.xlu0 %1972, %v2231_v17  }
  0xe2   :  { %v2502_v46 = vpop.permute.xlu1 %358  ;;  %v2504_v59 = vpop.permute.xlu0 %362 }
  0xe5   :  { %744 = vperm.xlu1 %1973, %v2224_v16   ;;  %764 = vperm.xlu0 %1972, %v2243_v19  }
  0xe6   :  { %v2508_v60 = vpop.permute.xlu1 %366  ;;  %v2510_v61 = vpop.permute.xlu0 %370 }
  0xe9   :  { %752 = vperm.xlu1 %1973, %v2236_v18   ;;  %1975 = vset.pattern.permute.xlu0 %v3805_v0 }
  0xea   :  { %v2514_v43 = vpop.permute.xlu1 %374  ;;  %1082 = vperm.xlu0 %1975, %v2140_v2   ;;  %v2517_v62 = vpop.permute.xlu0 %378 }
  0xeb   :  { %3850 = vst [vmem:[#allocation36_spill] sm:$0xff] %v2514_v43  ;;  %3851 = vst [vmem:[#allocation37_spill] sm:$0xff] %v2517_v62 }
  0xed   :  { %760 = vperm.xlu1 %1973, %v2248_v20  }
  0xee   :  { %v2520_v58 = vpop.permute.xlu1 %382  ;;  %1150 = vperm.xlu0 %1975, %v2231_v17   ;;  %v2523_v45 = vpop.permute.xlu0 %386 }
  0xef   :  { %3852 = vst [vmem:[#allocation38_spill] sm:$0xff] %v2520_v58  ;;  %3853 = vst [vmem:[#allocation39_spill] sm:$0xff] %v2523_v45 }
  0xf1   :  { %1974 = vset.pattern.permute.xlu1 %v3807_v57 }
  0xf2   :  { %v2526_v41 = vpop.permute.xlu1 %390  ;;  %885 = vperm.xlu1 %1974, %v2140_v2   ;;  %1154 = vperm.xlu0 %1975, %v2248_v20   ;;  %v2530_v0 = vpop.permute.xlu0 %394 }
  0xf3   :  { %3854 = vst [vmem:[#allocation40_spill] sm:$0xff] %v2526_v41  ;;  %3855 = vst [vmem:[#allocation41_spill] sm:$0xff] %v2530_v0 }
  0xf6   :  { %v2532_v49 = vpop.permute.xlu1 %398  ;;  %949 = vperm.xlu1 %1974, %v2236_v18   ;;  %1158 = vperm.xlu0 %1975, %v2243_v19   ;;  %v2536_v58 = vpop.permute.xlu0 %402 }
  0xf7   :  { %3856 = vst [vmem:[#allocation42_spill] sm:$0xff] %v2532_v49  ;;  %3857 = vst [vmem:[#allocation43_spill] sm:$0xff] %v2536_v58  ;;  %v3862_v49 = vmov 5  }
  0xfa   :  { %v2538_v45 = vpop.permute.xlu1 %406  ;;  %953 = vperm.xlu1 %1974, %v2231_v17   ;;  %1162 = vperm.xlu0 %1975, %v2260_v22   ;;  %v2542_v57 = vpop.permute.xlu0 %410 }
  0xfb   :  { %3858 = vst [vmem:[#allocation44_spill] sm:$0xff] %v2538_v45  ;;  %3859 = vst [vmem:[#allocation45_spill] sm:$0xff] %v2542_v57 }
  0xfe   :  { %v2544_v41 = vpop.permute.xlu1 %414  ;;  %957 = vperm.xlu1 %1974, %v2248_v20   ;;  %1166 = vperm.xlu0 %1975, %v2255_v21   ;;  %v2548_v0 = vpop.permute.xlu0 %418 }
  0xff   :  { %3860 = vst [vmem:[#allocation46_spill] sm:$0xff] %v2544_v41  ;;  %3861 = vst [vmem:[#allocation47_spill] sm:$0xff] %v2548_v0  ;;  %v3863_v0 = vmov 3  }
 0x102   :  { %1976 = vset.pattern.permute.xlu1 %v3862_v49  ;;  %1170 = vperm.xlu0 %1975, %v2272_v24  }
 0x103   :  { %1086 = vperm.xlu1 %1976, %v2152_v4   ;;  %v2553_v45 = vpop.permute.xlu1 %491  ;;  %v2555_v58 = vpop.permute.xlu0 %495 }
 0x106   :  { %1174 = vperm.xlu0 %1975, %v2267_v23  }
 0x107   :  { %1146 = vperm.xlu1 %1976, %v2236_v18   ;;  %v2559_v41 = vpop.permute.xlu1 %499  ;;  %v2561_v57 = vpop.permute.xlu0 %507 }
 0x10a   :  { %1178 = vperm.xlu0 %1975, %v2284_v26  }
 0x10b   :  { %1977 = vset.pattern.permute.xlu1 %v3863_v0  ;;  %v2565_v44 = vpop.permute.xlu1 %503  ;;  %v2567_v62 = vpop.permute.xlu0 %515 }
 0x10c   :  { %3864 = vst [vmem:[#allocation48_spill] sm:$0xff] %v2567_v62  ;;  %768 = vperm.xlu1 %1977, %v2260_v22  }
 0x10e   :  { %1182 = vperm.xlu0 %1975, %v2279_v25  }
 0x10f   :  { %v2571_v55 = vpop.permute.xlu1 %511  ;;  %v2573_v63 = vpop.permute.xlu0 %523 }
 0x110   :  { %3865 = vst [vmem:[#allocation49_spill] sm:$0xff] %v2571_v55  ;;  %3866 = vst [vmem:[#allocation50_spill] sm:$0xff] %v2573_v63  ;;  %1978 = vset.pattern.permute.xlu1 %v3867_v42  ;;  %v3809_v63 = vmov 6  }
 0x111   :  { %961 = vperm.xlu1 %1978, %v2243_v19  }
 0x112   :  { %1186 = vperm.xlu0 %1975, %v2296_v28  }
 0x113   :  { %v2578_v43 = vpop.permute.xlu1 %519  ;;  %v2580_v56 = vpop.permute.xlu0 %531 }
 0x114   :  { %3868 = vst [vmem:[#allocation51_spill] sm:$0xff] %v2578_v43  ;;  %3869 = vst [vmem:[#allocation52_spill] sm:$0xff] %v2580_v56 }
 0x115   :  { %1979 = vset.pattern.permute.xlu1 %v3862_v49 }
 0x116   :  { %1090 = vperm.xlu1 %1979, %v2135_v1   ;;  %1190 = vperm.xlu0 %1975, %v2291_v27  }
 0x117   :  { %v2585_v62 = vpop.permute.xlu1 %527  ;;  %v2587_v55 = vpop.permute.xlu0 %539 }
 0x118   :  { %3870 = vst [vmem:[#allocation53_spill] sm:$0xff] %v2585_v62  ;;  %3871 = vst [vmem:[#allocation54_spill] sm:$0xff] %v2587_v55 }
 0x11a   :  { %1980 = vset.pattern.permute.xlu1 %v3809_v63  ;;  %1194 = vperm.xlu0 %1975, %v2308_v30  }
 0x11b   :  { %1279 = vperm.xlu1 %1980, %v2140_v2   ;;  %v2592_v43 = vpop.permute.xlu1 %535  ;;  %v2594_v56 = vpop.permute.xlu0 %547 }
 0x11c   :  { %3872 = vst [vmem:[#allocation55_spill] sm:$0xff] %v2592_v43  ;;  %3873 = vst [vmem:[#allocation56_spill] sm:$0xff] %v2594_v56 }
 0x11e   :  { %1198 = vperm.xlu0 %1975, %v2303_v29  }
 0x11f   :  { %1283 = vperm.xlu1 %1980, %v2152_v4   ;;  %v2598_v48 = vpop.permute.xlu1 %543  ;;  %v2600_v62 = vpop.permute.xlu0 %555 }
 0x120   :  { %3874 = vst [vmem:[#allocation57_spill] sm:$0xff] %v2598_v48  ;;  %3875 = vst [vmem:[#allocation58_spill] sm:$0xff] %v2600_v62  ;;  %v3811_v62 = vmov 7  }
 0x122   :  { %2034 = vset.pattern.permute.xlu0 %v3867_v42 }
 0x123   :  { %1347 = vperm.xlu1 %1980, %v2231_v17   ;;  %v2604_v63 = vpop.permute.xlu1 %551  ;;  %889 = vperm.xlu0 %2034, %v2152_v4   ;;  %v2607_v55 = vpop.permute.xlu0 %563 }
 0x124   :  { %3876 = vst [vmem:[#allocation59_spill] sm:$0xff] %v2604_v63  ;;  %3877 = vst [vmem:[#allocation60_spill] sm:$0xff] %v2607_v55 }
 0x127   :  { %1981 = vset.pattern.permute.xlu1 %v3863_v0  ;;  %v2610_v56 = vpop.permute.xlu1 %559  ;;  %893 = vperm.xlu0 %2034, %v2135_v1   ;;  %v2613_v43 = vpop.permute.xlu0 %571 }
 0x128   :  { %3878 = vst [vmem:[#allocation61_spill] sm:$0xff] %v2610_v56  ;;  %3879 = vst [vmem:[#allocation62_spill] sm:$0xff] %v2613_v43  ;;  %772 = vperm.xlu1 %1981, %v2255_v21  }
 0x12b   :  { %v2616_v48 = vpop.permute.xlu1 %567  ;;  %897 = vperm.xlu0 %2034, %v2147_v3   ;;  %v2619_v39 = vpop.permute.xlu0 %579 }
 0x12c   :  { %3880 = vst [vmem:[#allocation63_spill] sm:$0xff] %v2616_v48  ;;  %3881 = vst [vmem:[#allocation64_spill] sm:$0xff] %v2619_v39  ;;  %1982 = vset.pattern.permute.xlu1 %v3867_v42  ;;  %v3886_v39 = vmov 6  }
 0x12d   :  { %965 = vperm.xlu1 %1982, %v2260_v22  }
 0x12f   :  { %v2623_v63 = vpop.permute.xlu1 %575  ;;  %901 = vperm.xlu0 %2034, %v2164_v6   ;;  %v2626_v56 = vpop.permute.xlu0 %587 }
 0x130   :  { %3882 = vst [vmem:[#allocation65_spill] sm:$0xff] %v2623_v63  ;;  %3883 = vst [vmem:[#allocation66_spill] sm:$0xff] %v2626_v56 }
 0x131   :  { %1983 = vset.pattern.permute.xlu1 %v3862_v49 }
 0x132   :  { %1094 = vperm.xlu1 %1983, %v2147_v3  }
 0x133   :  { %v2630_v43 = vpop.permute.xlu1 %583  ;;  %905 = vperm.xlu0 %2034, %v2159_v5   ;;  %v2633_v48 = vpop.permute.xlu0 %595 }
 0x134   :  { %3884 = vst [vmem:[#allocation67_spill] sm:$0xff] %v2630_v43  ;;  %3885 = vst [vmem:[#allocation68_spill] sm:$0xff] %v2633_v48 }
 0x136   :  { %1984 = vset.pattern.permute.xlu1 %v3886_v39 }
 0x137   :  { %1287 = vperm.xlu1 %1984, %v2135_v1   ;;  %v2637_v55 = vpop.permute.xlu1 %591  ;;  %909 = vperm.xlu0 %2034, %v2176_v8   ;;  %v2640_v63 = vpop.permute.xlu0 %603 }
 0x138   :  { %3887 = vst [vmem:[#allocation69_spill] sm:$0xff] %v2637_v55  ;;  %3888 = vst [vmem:[#allocation70_spill] sm:$0xff] %v2640_v63 }
 0x13b   :  { %1351 = vperm.xlu1 %1984, %v2248_v20   ;;  %v2643_v56 = vpop.permute.xlu1 %599  ;;  %913 = vperm.xlu0 %2034, %v2171_v7   ;;  %v2646_v43 = vpop.permute.xlu0 %611 }
 0x13c   :  { %3889 = vst [vmem:[#allocation71_spill] sm:$0xff] %v2643_v56  ;;  %3890 = vst [vmem:[#allocation72_spill] sm:$0xff] %v2646_v43 }
 0x13f   :  { %1985 = vset.pattern.permute.xlu1 %v3811_v62  ;;  %v2649_v48 = vpop.permute.xlu1 %607  ;;  %917 = vperm.xlu0 %2034, %v2188_v10  }
 0x140   :  { %3891 = vst [vmem:[#allocation73_spill] sm:$0xff] %v2649_v48  ;;  %1480 = vperm.xlu1 %1985, %v2152_v4   ;;  %v2653_v55 = vpop.permute.xlu0 %688 }
 0x141   :  { %3892 = vst [vmem:[#allocation74_spill] sm:$0xff] %v2653_v55 }
 0x143   :  { %v2655_v63 = vpop.permute.xlu1 %615  ;;  %921 = vperm.xlu0 %2034, %v2183_v9  }
 0x144   :  { %3893 = vst [vmem:[#allocation75_spill] sm:$0xff] %v2655_v63  ;;  %1540 = vperm.xlu1 %1985, %v2236_v18   ;;  %v2659_v56 = vpop.permute.xlu0 %700 }
 0x145   :  { %3894 = vst [vmem:[#allocation76_spill] sm:$0xff] %v2659_v56 }
 0x147   :  { %925 = vperm.xlu0 %2034, %v2200_v12  }
 0x148   :  { %1986 = vset.pattern.permute.xlu1 %v3863_v0  ;;  %v2663_v62 = vpop.permute.xlu1 %692  ;;  %v2665_v43 = vpop.permute.xlu0 %708 }
 0x149   :  { %3895 = vst [vmem:[#allocation77_spill] sm:$0xff] %v2665_v43  ;;  %776 = vperm.xlu1 %1986, %v2272_v24  }
 0x14b   :  { %929 = vperm.xlu0 %2034, %v2195_v11  }
 0x14c   :  { %v2669_v4 = vpop.permute.xlu1 %696  ;;  %v2671_v63 = vpop.permute.xlu0 %716 }
 0x14d   :  { %3896 = vst [vmem:[#allocation78_spill] sm:$0xff] %v2669_v4  ;;  %3897 = vst [vmem:[#allocation79_spill] sm:$0xff] %v2671_v63  ;;  %1987 = vset.pattern.permute.xlu1 %v3867_v42 }
 0x14e   :  { %969 = vperm.xlu1 %1987, %v2255_v21  }
 0x14f   :  { %933 = vperm.xlu0 %2034, %v2212_v14  }
 0x150   :  { %v2676_v48 = vpop.permute.xlu1 %704  ;;  %v2678_v56 = vpop.permute.xlu0 %724 }
 0x151   :  { %3898 = vst [vmem:[#allocation80_spill] sm:$0xff] %v2676_v48  ;;  %3899 = vst [vmem:[#allocation81_spill] sm:$0xff] %v2678_v56 }
 0x152   :  { %1988 = vset.pattern.permute.xlu1 %v3862_v49 }
 0x153   :  { %1098 = vperm.xlu1 %1988, %v2164_v6   ;;  %937 = vperm.xlu0 %2034, %v2207_v13  }
 0x154   :  { %v2683_v43 = vpop.permute.xlu1 %712  ;;  %v2685_v4 = vpop.permute.xlu0 %732 }
 0x155   :  { %3900 = vst [vmem:[#allocation82_spill] sm:$0xff] %v2683_v43  ;;  %3901 = vst [vmem:[#allocation83_spill] sm:$0xff] %v2685_v4  ;;  %v3906_v4 = vmov 7  }
 0x157   :  { %1989 = vset.pattern.permute.xlu1 %v3886_v39  ;;  %941 = vperm.xlu0 %2034, %v2224_v16  }
 0x158   :  { %1291 = vperm.xlu1 %1989, %v2147_v3   ;;  %v2690_v14 = vpop.permute.xlu1 %720  ;;  %v2692_v63 = vpop.permute.xlu0 %740 }
 0x159   :  { %3902 = vst [vmem:[#allocation84_spill] sm:$0xff] %v2690_v14  ;;  %3903 = vst [vmem:[#allocation85_spill] sm:$0xff] %v2692_v63 }
 0x15b   :  { %1009 = vperm.xlu0 %2034, %v2315_v31  }
 0x15c   :  { %1355 = vperm.xlu1 %1989, %v2243_v19   ;;  %v2696_v56 = vpop.permute.xlu1 %728  ;;  %v2698_v48 = vpop.permute.xlu0 %748 }
 0x15d   :  { %3904 = vst [vmem:[#allocation86_spill] sm:$0xff] %v2696_v56  ;;  %3905 = vst [vmem:[#allocation87_spill] sm:$0xff] %v2698_v48 }
 0x15f   :  { %2038 = vset.pattern.permute.xlu0 %v3886_v39 }
 0x160   :  { %1990 = vset.pattern.permute.xlu1 %v3906_v4  ;;  %v2702_v43 = vpop.permute.xlu1 %736  ;;  %1343 = vperm.xlu0 %2038, %v2236_v18   ;;  %v2705_v55 = vpop.permute.xlu0 %756 }
 0x161   :  { %3907 = vst [vmem:[#allocation88_spill] sm:$0xff] %v2702_v43  ;;  %1548 = vperm.xlu1 %1990, %v2248_v20  }
 0x164   :  { %v2708_v63 = vpop.permute.xlu1 %744  ;;  %1331 = vperm.xlu0 %2038, %v2207_v13   ;;  %v2711_v31 = vpop.permute.xlu0 %764 }
 0x165   :  { %3908 = vst [vmem:[#allocation89_spill] sm:$0xff] %v2708_v63  ;;  %1991 = vset.pattern.permute.xlu1 %v3863_v0 }
 0x166   :  { %780 = vperm.xlu1 %1991, %v2267_v23  }
 0x168   :  { %v2715_v48 = vpop.permute.xlu1 %752  ;;  %1335 = vperm.xlu0 %2038, %v2224_v16  }
 0x169   :  { %v2718_v43 = vpop.permute.xlu0 %1082 }
 0x16a   :  { %1992 = vset.pattern.permute.xlu1 %v3867_v42 }
 0x16b   :  { %973 = vperm.xlu1 %1992, %v2272_v24  }
 0x16c   :  { %v2722_v18 = vpop.permute.xlu1 %760  ;;  %2043 = vset.pattern.permute.xlu0 %v3906_v4 }
 0x16d   :  { %1476 = vperm.xlu0 %2043, %v2140_v2   ;;  %v2726_v13 = vpop.permute.xlu0 %1150 }
 0x16e   :  { %3909 = vst [vmem:[#allocation90_spill] sm:$0xff] %v2726_v13 }
 0x16f   :  { %1993 = vset.pattern.permute.xlu1 %v3862_v49 }
 0x170   :  { %1102 = vperm.xlu1 %1993, %v2159_v5  }
 0x171   :  { %v2730_v20 = vpop.permute.xlu1 %885  ;;  %1544 = vperm.xlu0 %2043, %v2231_v17   ;;  %v2733_v63 = vpop.permute.xlu0 %1154 }
 0x172   :  { %3910 = vst [vmem:[#allocation91_spill] sm:$0xff] %v2733_v63 }
 0x174   :  { %1994 = vset.pattern.permute.xlu1 %v3886_v39 }
 0x175   :  { %1295 = vperm.xlu1 %1994, %v2164_v6   ;;  %v2737_v56 = vpop.permute.xlu1 %949  ;;  %1484 = vperm.xlu0 %2043, %v2135_v1   ;;  %v2740_v2 = vpop.permute.xlu0 %1158 }
 0x176   :  { %3911 = vst [vmem:[#allocation92_spill] sm:$0xff] %v2740_v2 }
 0x179   :  { %1359 = vperm.xlu1 %1994, %v2260_v22   ;;  %v2743_v14 = vpop.permute.xlu1 %953  ;;  %1488 = vperm.xlu0 %2043, %v2147_v3   ;;  %v2746_v13 = vpop.permute.xlu0 %1162 }
 0x17a   :  { %3912 = vst [vmem:[#allocation93_spill] sm:$0xff] %v2746_v13 }
 0x17d   :  { %1995 = vset.pattern.permute.xlu1 %v3906_v4  ;;  %v2749_v17 = vpop.permute.xlu1 %957  ;;  %1492 = vperm.xlu0 %2043, %v2164_v6   ;;  %v2752_v63 = vpop.permute.xlu0 %1166 }
 0x17e   :  { %3913 = vst [vmem:[#allocation94_spill] sm:$0xff] %v2752_v63  ;;  %1552 = vperm.xlu1 %1995, %v2243_v19  }
 0x181   :  { %v2755_v1 = vpop.permute.xlu0 %1170  ;;  %1496 = vperm.xlu0 %2043, %v2159_v5  }
 0x182   :  { %3914 = vst [vmem:[#allocation95_spill] sm:$0xff] %v2755_v1  ;;  %1996 = vset.pattern.permute.xlu1 %v3863_v0  ;;  %v2759_v2 = vpop.permute.xlu1 %1086 }
 0x183   :  { %784 = vperm.xlu1 %1996, %v2284_v26  }
 0x185   :  { %v2762_v3 = vpop.permute.xlu0 %1174  ;;  %1500 = vperm.xlu0 %2043, %v2176_v8  }
 0x186   :  { %3915 = vst [vmem:[#allocation96_spill] sm:$0xff] %v2762_v3  ;;  %v2765_v13 = vpop.permute.xlu1 %1146 }
 0x187   :  { %1997 = vset.pattern.permute.xlu1 %v3867_v42 }
 0x188   :  { %977 = vperm.xlu1 %1997, %v2267_v23  }
 0x189   :  { %v2769_v6 = vpop.permute.xlu0 %1178  ;;  %1504 = vperm.xlu0 %2043, %v2171_v7  }
 0x18a   :  { %3916 = vst [vmem:[#allocation97_spill] sm:$0xff] %v2769_v6 }
 0x18b   :  { %v2772_v19 = vpop.permute.xlu1 %768 }
 0x18c   :  { %3917 = vst [vmem:[#allocation98_spill] sm:$0xff] %v2772_v19  ;;  %1998 = vset.pattern.permute.xlu1 %v3862_v49 }
 0x18d   :  { %1106 = vperm.xlu1 %1998, %v2176_v8   ;;  %v2776_v1 = vpop.permute.xlu0 %1182  ;;  %1508 = vperm.xlu0 %2043, %v2188_v10  }
 0x18e   :  { %3918 = vst [vmem:[#allocation99_spill] sm:$0xff] %v2776_v1 }
 0x190   :  { %v2779_v3 = vpop.permute.xlu1 %961 }
 0x191   :  { %3919 = vst [vmem:[#allocation100_spill] sm:$0xff] %v2779_v3  ;;  %1999 = vset.pattern.permute.xlu1 %v3886_v39  ;;  %v2782_v63 = vpop.permute.xlu0 %1186  ;;  %1512 = vperm.xlu0 %2043, %v2183_v9  }
 0x192   :  { %3920 = vst [vmem:[#allocation101_spill] sm:$0xff] %v2782_v63  ;;  %1299 = vperm.xlu1 %1999, %v2159_v5  }
 0x195   :  { %v2786_v6 = vpop.permute.xlu1 %1090  ;;  %v2788_v19 = vpop.permute.xlu0 %1190  ;;  %1516 = vperm.xlu0 %2043, %v2200_v12  }
 0x196   :  { %3921 = vst [vmem:[#allocation102_spill] sm:$0xff] %v2788_v19  ;;  %1363 = vperm.xlu1 %1999, %v2255_v21  }
 0x199   :  { %v2792_v1 = vpop.permute.xlu0 %1194  ;;  %1520 = vperm.xlu0 %2043, %v2195_v11  }
 0x19a   :  { %3922 = vst [vmem:[#allocation103_spill] sm:$0xff] %v2792_v1  ;;  %2000 = vset.pattern.permute.xlu1 %v3906_v4  ;;  %v2796_v3 = vpop.permute.xlu1 %1279 }
 0x19b   :  { %1556 = vperm.xlu1 %2000, %v2260_v22  }
 0x19d   :  { %v2799_v9 = vpop.permute.xlu0 %1198  ;;  %1588 = vperm.xlu0 %2043, %v2308_v30  }
 0x19e   :  { %3923 = vst [vmem:[#allocation104_spill] sm:$0xff] %v2799_v9  ;;  %v2802_v5 = vpop.permute.xlu1 %1283 }
 0x19f   :  { %2001 = vset.pattern.permute.xlu1 %v3863_v0 }
 0x1a0   :  { %788 = vperm.xlu1 %2001, %v2279_v25  }
 0x1a1   :  { %1592 = vperm.xlu0 %2043, %v2303_v29  }
 0x1a2   :  { %v2807_v12 = vpop.permute.xlu1 %1347  ;;  %v2809_v11 = vpop.permute.xlu0 %889 }
 0x1a4   :  { %2002 = vset.pattern.permute.xlu1 %v3867_v42 }
 0x1a5   :  { %981 = vperm.xlu1 %2002, %v2284_v26   ;;  %1532 = vperm.xlu0 %2043, %v2224_v16  }
 0x1a6   :  { %v2814_v22 = vpop.permute.xlu0 %893 }
 0x1a7   :  { %v2816_v30 = vpop.permute.xlu1 %772 }
 0x1a8   :  { %3924 = vst [vmem:[#allocation105_spill] sm:$0xff] %v2816_v30 }
 0x1a9   :  { %2003 = vset.pattern.permute.xlu1 %v3862_v49  ;;  %1536 = vperm.xlu0 %2043, %v2219_v15  }
 0x1aa   :  { %1110 = vperm.xlu1 %2003, %v2171_v7   ;;  %v2821_v29 = vpop.permute.xlu0 %897 }
 0x1ac   :  { %v2823_v9 = vpop.permute.xlu1 %965 }
 0x1ad   :  { %3925 = vst [vmem:[#allocation106_spill] sm:$0xff] %v2823_v9 }
 0x1ae   :  { %2004 = vset.pattern.permute.xlu1 %v3886_v39  ;;  %v2826_v1 = vpop.permute.xlu0 %901 }
 0x1af   :  { %1303 = vperm.xlu1 %2004, %v2176_v8  }
 0x1b1   :  { %v2829_v16 = vpop.permute.xlu1 %1094 }
 0x1b2   :  { %v2831_v26 = vpop.permute.xlu0 %905 }
 0x1b3   :  { %3926 = vst [vmem:[#allocation107_spill] sm:$0xff] %v2831_v26  ;;  %1367 = vperm.xlu1 %2004, %v2272_v24  }
 0x1b6   :  { %v2834_v19 = vpop.permute.xlu1 %1287  ;;  %v2836_v15 = vpop.permute.xlu0 %909 }
 0x1b7   :  { %3927 = vst [vmem:[#allocation108_spill] sm:$0xff] %v2836_v15  ;;  %2005 = vset.pattern.permute.xlu1 %v3906_v4 }
 0x1b8   :  { %1560 = vperm.xlu1 %2005, %v2255_v21  }
 0x1ba   :  { %v2840_v63 = vpop.permute.xlu1 %1351  ;;  %v2842_v30 = vpop.permute.xlu0 %913 }
 0x1bb   :  { %3928 = vst [vmem:[#allocation109_spill] sm:$0xff] %v2840_v63  ;;  %3929 = vst [vmem:[#allocation110_spill] sm:$0xff] %v2842_v30 }
 0x1bc   :  { %2006 = vset.pattern.permute.xlu1 %v3863_v0 }
 0x1bd   :  { %792 = vperm.xlu1 %2006, %v2296_v28  }
 0x1be   :  { %v2846_v8 = vpop.permute.xlu0 %917 }
 0x1bf   :  { %3930 = vst [vmem:[#allocation111_spill] sm:$0xff] %v2846_v8  ;;  %v2848_v9 = vpop.permute.xlu1 %1480 }
 0x1c1   :  { %2007 = vset.pattern.permute.xlu1 %v3867_v42 }
 0x1c2   :  { %985 = vperm.xlu1 %2007, %v2279_v25   ;;  %v2852_v15 = vpop.permute.xlu0 %921 }
 0x1c3   :  { %3931 = vst [vmem:[#allocation112_spill] sm:$0xff] %v2852_v15  ;;  %v2854_v26 = vpop.permute.xlu1 %1540 }
 0x1c4   :  { %3932 = vst [vmem:[#allocation113_spill] sm:$0xff] %v2854_v26 }
 0x1c6   :  { %2008 = vset.pattern.permute.xlu1 %v3862_v49  ;;  %v2857_v21 = vpop.permute.xlu0 %925 }
 0x1c7   :  { %3933 = vst [vmem:[#allocation114_spill] sm:$0xff] %v2857_v21  ;;  %1114 = vperm.xlu1 %2008, %v2188_v10   ;;  %v2878_v10 = vld [vmem:[%s3797_s1] ss:$0 sm:$0xff] }
 0x1c8   :  { %v2860_v30 = vpop.permute.xlu1 %776  ;;  %3940 = vst [vmem:[#allocation121_spill] sm:$0xff] %v2878_v10 }
 0x1c9   :  { %3934 = vst [vmem:[#allocation115_spill] sm:$0xff] %v2860_v30 }
 0x1ca   :  { %v2862_v63 = vpop.permute.xlu0 %929 }
 0x1cb   :  { %3935 = vst [vmem:[#allocation116_spill] sm:$0xff] %v2862_v63  ;;  %2009 = vset.pattern.permute.xlu1 %v3886_v39  ;;  %v2893_v63 = vld [vmem:[%s3797_s1 + $0x1] ss:$0 sm:$0xff] }
 0x1cc   :  { %1307 = vperm.xlu1 %2009, %v2171_v7   ;;  %v229_v7 = vmul.f32 %v2878_v10, %v2364_v38 }
 0x1cd   :  { %v2866_v8 = vpop.permute.xlu1 %969 }
 0x1ce   :  { %3936 = vst [vmem:[#allocation117_spill] sm:$0xff] %v2866_v8  ;;  %v2868_v25 = vpop.permute.xlu0 %933  ;;  %v246_v8 = vmul.f32 %v2878_v10, %v2412_v54 }
 0x1cf   :  { %3937 = vst [vmem:[#allocation118_spill] sm:$0xff] %v2868_v25  ;;  %v230_v25 = vmul.f32 %v2878_v10, %v2356_v34  ;;  %v232_v34 = vmul.f32 %v2878_v10, %v2370_v40 }
 0x1d0   :  { %1371 = vperm.xlu1 %2009, %v2267_v23   ;;  %v228_v23 = vmul.f32 %v2878_v10, %v2358_v35  ;;  %v245_v35 = vmul.f32 %v2878_v10, %v2404_v51 }
 0x1d2   :  { %v2871_v15 = vpop.permute.xlu1 %1098  ;;  %v2873_v26 = vpop.permute.xlu0 %937 }
 0x1d3   :  { %3938 = vst [vmem:[#allocation119_spill] sm:$0xff] %v2871_v15  ;;  %3939 = vst [vmem:[#allocation120_spill] sm:$0xff] %v2873_v26  ;;  %v231_v26 = vmul.f32 %v2878_v10, %v2362_v37  ;;  %v244_v37 = vmul.f32 %v2878_v10, %v2406_v52  ;;  %v426_v15 = vmul.f32 %v2893_v63, %v2453_v47 }
 0x1d4   :  { %2010 = vset.pattern.permute.xlu1 %v3906_v4  ;;  %v425_v52 = vmul.f32 %v2893_v63, %v2455_v50  ;;  %v427_v47 = vmul.f32 %v2893_v63, %v2459_v32  ;;  %v441_v32 = vmul.f32 %v2893_v63, %v2502_v46 }
 0x1d5   :  { %1564 = vperm.xlu1 %2010, %v2272_v24   ;;  %v2900_v24 = vld [vmem:[%s3798_s2] ss:$0 sm:$0xff] }
 0x1d6   :  { %v2895_v21 = vpop.permute.xlu0 %941  ;;  %v261_v30 = vadd.f32 %v2900_v24, %v229_v7  ;;  %v262_v40 = vadd.f32 %v2900_v24, %v230_v25  ;;  %v260_v51 = vadd.f32 %v2900_v24, %v228_v23  ;;  %v264_v54 = vadd.f32 %v2900_v24, %v232_v34 }
 0x1d7   :  { %3941 = vst [vmem:[#allocation122_spill] sm:$0xff] %v2895_v21  ;;  %v2904_v38 = vpop.permute.xlu1 %1291  ;;  %v247_v21 = vmul.f32 %v2878_v10, %v2410_v53  ;;  %v428_v7 = vmul.f32 %v2893_v63, %v2461_v33  ;;  %v429_v25 = vmul.f32 %v2893_v63, %v2466_v36  ;;  %v276_v23 = vadd.f32 %v2900_v24, %v244_v37 }
 0x1d8   :  { %3942 = vst [vmem:[#allocation123_spill] sm:$0xff] %v2904_v38  ;;  %v263_v38 = vadd.f32 %v2900_v24, %v231_v26  ;;  %v2936_v26 = vld [vmem:[%s3797_s1 + $0x2] ss:$0 sm:$0xff]  ;;  %v442_v33 = vmul.f32 %v2893_v63, %v2504_v59  ;;  %v278_v36 = vadd.f32 %v2900_v24, %v246_v8  ;;  %v443_v10 = vmul.f32 %v2893_v63, %v2508_v60  ;;  %v2959_v59 = vld [vmem:[%s3797_s1 + $0x3] ss:$0 sm:$0xff] }
 0x1d9   :  { %2011 = vset.pattern.permute.xlu1 %v3863_v0  ;;  %v279_v34 = vadd.f32 %v2900_v24, %v247_v21  ;;  %v457_v0 = vadd.f32 %v425_v52, %v260_v51  ;;  %v622_v37 = vmul.f32 %v2936_v26, %v2553_v45  ;;  %v623_v46 = vmul.f32 %v2936_v26, %v2555_v58  ;;  %v3944_v52 = vld [vmem:[#allocation58_spill] sm:$0xff] }
 0x1da   :  { %796 = vperm.xlu1 %2011, %v2291_v27   ;;  %v2924_v53 = vpop.permute.xlu0 %1009  ;;  %v277_v27 = vadd.f32 %v2900_v24, %v245_v35  ;;  %v444_v35 = vmul.f32 %v2893_v63, %v2510_v61  ;;  %v461_v60 = vadd.f32 %v429_v25, %v264_v54  ;;  %v624_v8 = vmul.f32 %v2936_v26, %v2559_v41 }
 0x1db   :  { %3943 = vst [vmem:[#allocation124_spill] sm:$0xff] %v2924_v53  ;;  %v2938_v50 = vpop.permute.xlu1 %1355  ;;  %v458_v53 = vadd.f32 %v426_v15, %v261_v30  ;;  %v459_v30 = vadd.f32 %v427_v47, %v262_v40  ;;  %v460_v15 = vadd.f32 %v428_v7, %v263_v38  ;;  %v473_v45 = vadd.f32 %v441_v32, %v276_v23  ;;  %v2974_v38 = vld [vmem:[%s3797_s1 + $0x4] ss:$0 sm:$0xff]  ;;  %v3946_v32 = vld [vmem:[#allocation60_spill] sm:$0xff] }
 0x1dc   :  { %v474_v21 = vadd.f32 %v442_v33, %v277_v27  ;;  %v626_v58 = vmul.f32 %v2936_v26, %v2561_v57  ;;  %v820_v51 = vmul.f32 %v2959_v59, %v2663_v62  ;;  %v475_v41 = vadd.f32 %v443_v10, %v278_v36  ;;  %v3945_v47 = vld [vmem:[#allocation74_spill] sm:$0xff]  ;;  %v3947_v10 = vld [vmem:[#allocation61_spill] sm:$0xff] }
 0x1dd   :  { %v638_v54 = vmul.f32 %v2936_v26, %v3944_v52  ;;  %v819_v57 = vmul.f32 %v2959_v59, %v3945_v47  ;;  %v476_v7 = vadd.f32 %v444_v35, %v279_v34  ;;  %v654_v25 = vadd.f32 %v622_v37, %v457_v0  ;;  %v3948_v0 = vld [vmem:[#allocation63_spill] sm:$0xff]  ;;  %v3949_v35 = vld [vmem:[#allocation76_spill] sm:$0xff] }
 0x1de   :  { %2012 = vset.pattern.permute.xlu1 %v3867_v42  ;;  %v655_v62 = vadd.f32 %v623_v46, %v458_v53  ;;  %v1017_v27 = vmul.f32 %v2974_v38, %v2809_v11  ;;  %v656_v23 = vadd.f32 %v624_v8, %v459_v30  ;;  %v640_v33 = vmul.f32 %v2936_v26, %v3946_v32  ;;  %v3002_v46 = vld [vmem:[%s3797_s1 + $0x5] ss:$0 sm:$0xff] }
 0x1df   :  { %989 = vperm.xlu1 %2012, %v2296_v28   ;;  %v2965_v61 = vpop.permute.xlu0 %1343  ;;  %v625_v28 = vmul.f32 %v2936_v26, %v2565_v44  ;;  %v639_v36 = vmul.f32 %v2936_v26, %v3947_v10  ;;  %v1016_v44 = vmul.f32 %v2974_v38, %v2730_v20  ;;  %v658_v34 = vadd.f32 %v626_v58, %v461_v60  ;;  %v3007_v20 = vld [vmem:[%s3796_s0 + $0x48] sm:$0xff]  ;;  %v3950_v58 = vld [vmem:[#allocation78_spill] sm:$0xff] }
 0x1e0   :  { %v2976_v40 = vpop.permute.xlu1 %1548  ;;  %v641_v53 = vmul.f32 %v2936_v26, %v3948_v0  ;;  %v822_v11 = vmul.f32 %v2959_v59, %v3949_v35  ;;  %v852_v37 = vadd.f32 %v820_v51, %v655_v62  ;;  %v670_v60 = vadd.f32 %v638_v54, %v473_v45  ;;  %v3951_v51 = vld [vmem:[#allocation80_spill] sm:$0xff] }
 0x1e1   :  { %v657_v30 = vadd.f32 %v625_v28, %v460_v15  ;;  %v851_v8 = vadd.f32 %v819_v57, %v654_v25  ;;  %v821_v47 = vmul.f32 %v2959_v59, %v3950_v58  ;;  %v823_v62 = vmul.f32 %v2959_v59, %v3951_v51  ;;  %v3023_v15 = vld [vmem:[%s3797_s1 + $0x6] ss:$0 sm:$0xff] }
 0x1e2   :  { %v836_v10 = vmul.f32 %v2959_v59, %v2705_v55  ;;  %v835_v0 = vmul.f32 %v2959_v59, %v2715_v48  ;;  %v1049_v45 = vadd.f32 %v1017_v27, %v852_v37  ;;  %v672_v28 = vadd.f32 %v640_v33, %v475_v41 }
 0x1e3   :  { %2013 = vset.pattern.permute.xlu1 %v3862_v49  ;;  %v2993_v52 = vpop.permute.xlu0 %1331  ;;  %v671_v54 = vadd.f32 %v639_v36, %v474_v21  ;;  %v1213_v57 = vmul.f32 %v3002_v46, %v2718_v43  ;;  %v1048_v25 = vadd.f32 %v1016_v44, %v851_v8  ;;  %v673_v58 = vadd.f32 %v641_v53, %v476_v7  ;;  %v3045_v7 = vld [vmem:[%s3797_s1 + $0x7] ss:$0 sm:$0xff] }
 0x1e4   :  { %1118 = vperm.xlu1 %2013, %v3007_v20   ;;  %v3029_v51 = vadd.f32 %v822_v11, %v657_v30  ;;  %v1033_v48 = vmul.f32 %v2974_v38, %v2743_v14  ;;  %v1214_v55 = vmul.f32 %v3002_v46, %v2759_v2  ;;  %v853_v27 = vadd.f32 %v821_v47, %v656_v23  ;;  %v2053_v14 = vld [vmem:[%s3796_s0 + $0x40] sm:$0xff] }
 0x1e5   :  { %v3012_v32 = vpop.permute.xlu1 %780  ;;  %v838_v21 = vmul.f32 %v2959_v59, %v2711_v31  ;;  %v1032_v43 = vmul.f32 %v2974_v38, %v2737_v56  ;;  %v1410_v41 = vmul.f32 %v3023_v15, %v2796_v3  ;;  %v3050_v2 = vadd.f32 %v823_v62, %v658_v34  ;;  %v3952_v3 = vld [vmem:[#allocation90_spill] sm:$0xff] }
 0x1e6   :  { %v868_v23 = vadd.f32 %v836_v10, %v671_v54  ;;  %v867_v31 = vadd.f32 %v835_v0, %v670_v60  ;;  %v1246_v33 = vadd.f32 %v1214_v55, %v1049_v45  ;;  %v837_v56 = vmul.f32 %v2959_v59, %v2722_v18  ;;  %v3953_v54 = vld [vmem:[#allocation91_spill] sm:$0xff]  ;;  %v3954_v55 = vld [vmem:[#allocation92_spill] sm:$0xff] }
 0x1e7   :  { %v3027_v35 = vpop.permute.xlu0 %1335  ;;  %v1230_v44 = vmul.f32 %v3002_v46, %v3952_v3  ;;  %v1245_v53 = vadd.f32 %v1213_v57, %v1048_v25  ;;  %v1018_v11 = vmul.f32 %v2974_v38, %v2814_v22  ;;  %v1229_v34 = vmul.f32 %v3002_v46, %v2765_v13  ;;  %v3070_v22 = vld [vmem:[%s3796_s0 + $0xc0] sm:$0xff] }
 0x1e8   :  { %2014 = vset.pattern.permute.xlu1 %v3886_v39  ;;  %v1065_v37 = vadd.f32 %v1033_v48, %v868_v23  ;;  %v1411_v30 = vmul.f32 %v3023_v15, %v2802_v5  ;;  %v1608_v60 = vmul.f32 %v3045_v7, %v2848_v9  ;;  %v870_v47 = vadd.f32 %v838_v21, %v673_v58 }
 0x1e9   :  { %1311 = vperm.xlu1 %2014, %v2053_v14   ;;  %v1064_v18 = vadd.f32 %v1032_v43, %v867_v31  ;;  %v1442_v62 = vadd.f32 %v1410_v41, %v1245_v53  ;;  %v1034_v13 = vmul.f32 %v2974_v38, %v2749_v17  ;;  %v1427_v9 = vmul.f32 %v3023_v15, %v2807_v12  ;;  %v3955_v31 = vld [vmem:[#allocation100_spill] sm:$0xff] }
 0x1ea   :  { %v3052_v36 = vpop.permute.xlu1 %973  ;;  %v1443_v5 = vadd.f32 %v1411_v30, %v1246_v33  ;;  %v1426_v0 = vmul.f32 %v3023_v15, %v2965_v61  ;;  %v869_v45 = vadd.f32 %v837_v56, %v672_v28  ;;  %v1231_v57 = vmul.f32 %v3002_v46, %v3953_v54  ;;  %v3957_v30 = vld [vmem:[#allocation113_spill] sm:$0xff] }
 0x1eb   :  { %v1050_v25 = vadd.f32 %v1018_v11, %v853_v27  ;;  %v1232_v21 = vmul.f32 %v3002_v46, %v3954_v55  ;;  %v1261_v43 = vadd.f32 %v1229_v34, %v1064_v18  ;;  %v1262_v17 = vadd.f32 %v1230_v44, %v1065_v37  ;;  %v3956_v11 = vld [vmem:[#allocation109_spill] sm:$0xff]  ;;  %v3960_v55 = vld [vmem:[#allocation119_spill] sm:$0xff] }
 0x1ec   :  { %v1477_v8 = vpop.permute.xlu0 %1476  ;;  %v1640_v41 = vadd.f32 %v1608_v60, %v1443_v5  ;;  %v1215_v12 = vmul.f32 %v3002_v46, %v2786_v6  ;;  %v1019_v61 = vmul.f32 %v2974_v38, %v2821_v29  ;;  %v1412_v28 = vmul.f32 %v3023_v15, %v2834_v19  ;;  %v2055_v6 = vld [vmem:[%s3796_s0 + $0xb8] sm:$0xff] }
 0x1ed   :  { %v1607_v10 = vmul.f32 %v3045_v7, %v1477_v8  ;;  %1375 = vperm.xlu1 %2014, %v3070_v22   ;;  %v1066_v23 = vadd.f32 %v1034_v13, %v869_v45  ;;  %v1035_v33 = vmul.f32 %v2974_v38, %v3955_v31  ;;  %v1459_v56 = vadd.f32 %v1427_v9, %v1262_v17  ;;  %v3958_v9 = vld [vmem:[#allocation123_spill] sm:$0xff] }
 0x1ee   :  { %v1458_v3 = vadd.f32 %v1426_v0, %v1261_v43  ;;  %v1247_v44 = vadd.f32 %v1215_v12, %v1050_v25  ;;  %v1020_v29 = vmul.f32 %v2974_v38, %v2826_v1  ;;  %v1216_v19 = vmul.f32 %v3002_v46, %v2829_v16 }
 0x1ef   :  { %v1639_v58 = vadd.f32 %v1607_v10, %v1442_v62  ;;  %v3081_v48 = vpop.permute.xlu1 %1102  ;;  %v1428_v37 = vmul.f32 %v3023_v15, %v3956_v11  ;;  %v1672_v34 = vmax.f32 %v1640_v41, 0.0  ;;  %v1623_v60 = vmul.f32 %v3045_v7, %v3957_v30  ;;  %v3119_v41 = vld [vmem:[%s3796_s0 + $0xe0] sm:$0xff] }
 0x1f0   :  { %v1545_v14 = vpop.permute.xlu0 %1544  ;;  %v1051_v10 = vadd.f32 %v1019_v61, %v3029_v51  ;;  %v1444_v13 = vadd.f32 %v1412_v28, %v1247_v44  ;;  %v1413_v1 = vmul.f32 %v3023_v15, %v3958_v9  ;;  %v1067_v16 = vadd.f32 %v1035_v33, %v870_v47 }
 0x1f1   :  { %v1624_v27 = vmul.f32 %v3045_v7, %v1545_v14  ;;  %2015 = vset.pattern.permute.xlu1 %v3906_v4  ;;  %v1671_v53 = vmax.f32 %v1639_v58, 0.0  ;;  %v1263_v0 = vadd.f32 %v1231_v57, %v1066_v23  ;;  %v1655_v45 = vadd.f32 %v1623_v60, %v1458_v3 }
 0x1f2   :  { %1568 = vperm.xlu1 %2015, %v2055_v6   ;;  %v1625_v54 = vmul.f32 %v3045_v7, %v2976_v40  ;;  %v3959_v25 = vmov 3   ;;  %v1248_v58 = vadd.f32 %v1216_v19, %v1051_v10  ;;  %v1217_v43 = vmul.f32 %v3002_v46, %v3960_v55 }
 0x1f3   :  { %v1656_v8 = vadd.f32 %v1624_v27, %v1459_v56  ;;  %v1704_v51 = vsel %vm1703_vm0, %v1671_v53, 0.0  ;;  %v1052_v47 = vadd.f32 %v1020_v29, %v3050_v2  ;;  %v1460_v57 = vadd.f32 %v1428_v37, %v1263_v0  ;;  %v3136_v37 = vld [vmem:[%s3796_s0 + $0xd8] sm:$0xff] }
 0x1f4   :  { %v1296_v18 = vpop.permute.xlu1 %1295  ;;  %v1485_v62 = vpop.permute.xlu0 %1484  ;;  %v1705_v40 = vsel %vm1703_vm0, %v1672_v34, 0.0  ;;  %v1445_v28 = vadd.f32 %v1413_v1, %v1248_v58  ;;  %v1429_v33 = vmul.f32 %v3023_v15, %v2938_v50  ;;  %v1687_v56 = vmax.f32 %v1655_v45, 0.0  ;;  %v3147_v45 = vld [vmem:[%s3796_s0 + $0x50] sm:$0xff] }
 0x1f5   :  { %v1609_v5 = vmul.f32 %v3045_v7, %v1485_v62  ;;  %v1688_v14 = vmax.f32 %v1656_v8, 0.0  ;;  %v1414_v27 = vmul.f32 %v3023_v15, %v1296_v18  ;;  %v1657_v3 = vadd.f32 %v1625_v54, %v1460_v57 }
 0x1f6   :  { %2016 = vset.pattern.permute.xlu1 %v3959_v25  ;;  %v1706_v6 = vadd.f32 %v1705_v40, %v1704_v51  ;;  %v1249_v2 = vadd.f32 %v1217_v43, %v1052_v47  ;;  %v1264_v19 = vadd.f32 %v1232_v21, %v1067_v16  ;;  %v1741_v21 = vsel %vm1703_vm0, %v1687_v56, 0.0  ;;  %v3962_v47 = vld [vmem:[#allocation121_spill] sm:$0xff] }
 0x1f7   :  { %v1641_v17 = vadd.f32 %v1609_v5, %v1444_v13  ;;  %800 = vperm.xlu1 %2016, %v3119_v41   ;;  %v1742_v53 = vsel %vm1703_vm0, %v1688_v14, 0.0  ;;  %v1689_v62 = vmax.f32 %v1657_v3, 0.0  ;;  %v3965_v3 = vld [vmem:[#allocation49_spill] sm:$0xff] }
 0x1f8   :  { %v3124_v12 = vpop.permute.xlu1 %1359  ;;  %v1489_v61 = vpop.permute.xlu0 %1488  ;;  %v1446_v34 = vadd.f32 %v1414_v27, %v1249_v2  ;;  %v1461_v18 = vadd.f32 %v1429_v33, %v1264_v19  ;;  %v1743_v13 = vadd.f32 %v1742_v53, %v1741_v21  ;;  %v3173_v19 = vld [vmem:[%s3796_s0 + $0xc8] sm:$0xff]  ;;  %v3967_v53 = vld [vmem:[#allocation36_spill] sm:$0xff]  ;;  %v1218_v21 = vmul.f32 %v3002_v46, %v3081_v48 }
 0x1f9   :  { %v1673_v23 = vmax.f32 %v1641_v17, 0.0  ;;  %v1610_v31 = vmul.f32 %v3045_v7, %v1489_v61  ;;  %v1744_v54 = vsel %vm1703_vm0, %v1689_v62, 0.0  ;;  %v3961_v17 = vld [vmem:[#allocation2_spill] sm:$0xff] }
 0x1fa   :  { %v1745_v43 = vadd.f32 %v1744_v54, %v1743_v13  ;;  %v233_v57 = vmul.f32 %v3962_v47, %v3961_v17  ;;  %v3970_v13 = vld [vmem:[#allocation98_spill] sm:$0xff] }
 0x1fb   :  { %v1707_v44 = vsel %vm1703_vm0, %v1673_v23, 0.0  ;;  %v1642_v29 = vadd.f32 %v1610_v31, %v1445_v28  ;;  %2017 = vset.pattern.permute.xlu1 %v3867_v42  ;;  %v3963_v28 = vld [vmem:[#allocation25_spill] sm:$0xff]  ;;  %v3964_v23 = vld [vmem:[#allocation14_spill] sm:$0xff] }
 0x1fc   :  { %v1708_v11 = vadd.f32 %v1707_v44, %v1706_v6  ;;  %993 = vperm.xlu1 %2017, %v3136_v37   ;;  %v1493_v50 = vpop.permute.xlu0 %1492  ;;  %v430_v27 = vmul.f32 %v2893_v63, %v3963_v28  ;;  %v248_v31 = vmul.f32 %v3962_v47, %v3964_v23  ;;  %v265_v56 = vadd.f32 %v2900_v24, %v233_v57  ;;  %v3966_v44 = vld [vmem:[#allocation77_spill] sm:$0xff] }
 0x1fd   :  { %v1674_v30 = vmax.f32 %v1642_v29, 0.0  ;;  %v1611_v60 = vmul.f32 %v3045_v7, %v1493_v50  ;;  %v1553_v8 = vpop.permute.xlu1 %1552  ;;  %v627_v6 = vmul.f32 %v2936_v26, %v3965_v3  ;;  %v824_v29 = vmul.f32 %v2959_v59, %v3966_v44 }
 0x1fe   :  { %v1626_v10 = vmul.f32 %v3045_v7, %v1553_v8  ;;  %v462_v2 = vadd.f32 %v430_v27, %v265_v56  ;;  %v3969_v8 = vld [vmem:[#allocation62_spill] sm:$0xff]  ;;  %v1430_v56 = vmul.f32 %v3023_v15, %v3124_v12  ;;  %v3212_v12 = vld [vmem:[%s3796_s0 + $0x58] sm:$0xff] }
 0x1ff   :  { %v1709_v9 = vsel %vm1703_vm0, %v1674_v30, 0.0  ;;  %v1643_v1 = vadd.f32 %v1611_v60, %v1446_v34  ;;  %v3968_v34 = vld [vmem:[#allocation107_spill] sm:$0xff] }
 0x200   :  { %v1710_v5 = vadd.f32 %v1709_v9, %v1708_v11  ;;  %v1658_v16 = vadd.f32 %v1626_v10, %v1461_v18  ;;  %2018 = vset.pattern.permute.xlu1 %v3862_v49  ;;  %v445_v11 = vmul.f32 %v2893_v63, %v3967_v53  ;;  %v659_v50 = vadd.f32 %v627_v6, %v462_v2 }
 0x201   :  { %v1675_v0 = vmax.f32 %v1643_v1, 0.0  ;;  %1122 = vperm.xlu1 %2018, %v3147_v45   ;;  %v1021_v30 = vmul.f32 %v2974_v38, %v3968_v34  ;;  %v642_v18 = vmul.f32 %v2936_v26, %v3969_v8  ;;  %v839_v9 = vmul.f32 %v2959_v59, %v3970_v13  ;;  %v1497_v1 = vpop.permute.xlu0 %1496 }
 0x202   :  { %v1690_v58 = vmax.f32 %v1658_v16, 0.0  ;;  %v3151_v55 = vpop.permute.xlu1 %784  ;;  %v856_v62 = vadd.f32 %v824_v29, %v659_v50  ;;  %v1612_v48 = vmul.f32 %v3045_v7, %v1497_v1  ;;  %v3973_v50 = vld [vmem:[#allocation4_spill] sm:$0xff] }
 0x203   :  { %v1711_v51 = vsel %vm1703_vm0, %v1675_v0, 0.0  ;;  %v3971_v0 = vld [vmem:[#allocation106_spill] sm:$0xff]  ;;  %v234_v34 = vmul.f32 %v3962_v47, %v3973_v50 }
 0x204   :  { %v1712_v40 = vadd.f32 %v1711_v51, %v1710_v5  ;;  %v1746_v14 = vsel %vm1703_vm0, %v1690_v58, 0.0  ;;  %v1053_v5 = vadd.f32 %v1021_v30, %v856_v62  ;;  %v1036_v54 = vmul.f32 %v2974_v38, %v3971_v0 }
 0x205   :  { %v1747_v61 = vadd.f32 %v1746_v14, %v1745_v43  ;;  %2019 = vset.pattern.permute.xlu1 %v3886_v39  ;;  %v3972_v14 = vld [vmem:[#allocation93_spill] sm:$0xff]  ;;  %v266_v62 = vadd.f32 %v2900_v24, %v234_v34 }
 0x206   :  { %1315 = vperm.xlu1 %2019, %v3007_v20   ;;  %v280_v20 = vadd.f32 %v2900_v24, %v248_v31  ;;  %v1250_v43 = vadd.f32 %v1218_v21, %v1053_v5  ;;  %v1233_v28 = vmul.f32 %v3002_v46, %v3972_v14  ;;  %v3974_v21 = vld [vmem:[#allocation26_spill] sm:$0xff]  ;;  %v3976_v5 = vld [vmem:[#allocation13_spill] sm:$0xff] }
 0x207   :  { %v3163_v33 = vpop.permute.xlu1 %977 }
 0x208   :  { %v477_v10 = vadd.f32 %v445_v11, %v280_v20 }
 0x20a   :  { %1379 = vperm.xlu1 %2019, %v3173_v19   ;;  %v674_v16 = vadd.f32 %v642_v18, %v477_v10  ;;  %v431_v10 = vmul.f32 %v2893_v63, %v3974_v21 }
 0x20c   :  { %v1107_v60 = vpop.permute.xlu1 %1106  ;;  %v871_v17 = vadd.f32 %v839_v9, %v674_v16  ;;  %v3975_v9 = vld [vmem:[#allocation48_spill] sm:$0xff]  ;;  %v249_v16 = vmul.f32 %v3962_v47, %v3976_v5  ;;  %v463_v0 = vadd.f32 %v431_v10, %v266_v62  ;;  %v3983_v10 = vld [vmem:[#allocation94_spill] sm:$0xff] }
 0x20d   :  { %v628_v1 = vmul.f32 %v2936_v26, %v3975_v9  ;;  %v1234_v9 = vmul.f32 %v3002_v46, %v3983_v10 }
 0x20e   :  { %2020 = vset.pattern.permute.xlu1 %v3906_v4  ;;  %v1068_v27 = vadd.f32 %v1036_v54, %v871_v17  ;;  %v281_v14 = vadd.f32 %v2900_v24, %v249_v16 }
 0x20f   :  { %1572 = vperm.xlu1 %2020, %v3070_v22   ;;  %v3197_v22 = vld [vmem:[%s3796_s0 + $0xe8] sm:$0xff] }
 0x210   :  { %v1265_v6 = vadd.f32 %v1233_v28, %v1068_v27  ;;  %v3980_v28 = vld [vmem:[#allocation65_spill] sm:$0xff] }
 0x211   :  { %v1300_v58 = vpop.permute.xlu1 %1299  ;;  %v643_v27 = vmul.f32 %v2936_v26, %v3980_v28 }
 0x212   :  { %v1415_v51 = vmul.f32 %v3023_v15, %v1300_v58  ;;  %v1462_v29 = vadd.f32 %v1430_v56, %v1265_v6  ;;  %v3238_v58 = vld [vmem:[%s3796_s0 + $0xd0] sm:$0xff]  ;;  %v1219_v56 = vmul.f32 %v3002_v46, %v1107_v60  ;;  %v3981_v6 = vld [vmem:[#allocation105_spill] sm:$0xff] }
 0x213   :  { %2021 = vset.pattern.permute.xlu1 %v3959_v25 }
 0x214   :  { %v1447_v57 = vadd.f32 %v1415_v51, %v1250_v43  ;;  %804 = vperm.xlu1 %2021, %v3197_v22   ;;  %v660_v51 = vadd.f32 %v628_v1, %v463_v0 }
 0x215   :  { %v1364_v23 = vpop.permute.xlu1 %1363 }
 0x216   :  { %v1644_v31 = vadd.f32 %v1612_v48, %v1447_v57  ;;  %v3979_v48 = vld [vmem:[#allocation108_spill] sm:$0xff]  ;;  %v1431_v0 = vmul.f32 %v3023_v15, %v1364_v23  ;;  %v3283_v23 = vld [vmem:[%s3796_s0 + $0x60] sm:$0xff] }
 0x217   :  { %v1022_v17 = vmul.f32 %v2974_v38, %v3979_v48 }
 0x218   :  { %v1676_v3 = vmax.f32 %v1644_v31, 0.0  ;;  %2022 = vset.pattern.permute.xlu1 %v3867_v42 }
 0x219   :  { %997 = vperm.xlu1 %2022, %v3119_v41  }
 0x21a   :  { %v1713_v2 = vsel %vm1703_vm0, %v1676_v3, 0.0  ;;  %v1557_v44 = vpop.permute.xlu1 %1556 }
 0x21b   :  { %v1714_v20 = vadd.f32 %v1713_v2, %v1712_v40  ;;  %v1627_v53 = vmul.f32 %v3045_v7, %v1557_v44  ;;  %v840_v2 = vmul.f32 %v2959_v59, %v3981_v6  ;;  %v1501_v44 = vpop.permute.xlu0 %1500 }
 0x21c   :  { %v1613_v60 = vmul.f32 %v3045_v7, %v1501_v44 }
 0x21d   :  { %v1659_v11 = vadd.f32 %v1627_v53, %v1462_v29  ;;  %2023 = vset.pattern.permute.xlu1 %v3862_v49 }
 0x21e   :  { %1126 = vperm.xlu1 %2023, %v3212_v12  }
 0x21f   :  { %v1691_v30 = vmax.f32 %v1659_v11, 0.0  ;;  %v3217_v8 = vpop.permute.xlu1 %788  ;;  %v3982_v11 = vld [vmem:[#allocation117_spill] sm:$0xff] }
 0x220   :  { %v1037_v50 = vmul.f32 %v2974_v38, %v3982_v11 }
 0x221   :  { %v1748_v40 = vsel %vm1703_vm0, %v1691_v30, 0.0 }
 0x222   :  { %v3220_v18 = vadd.f32 %v1748_v40, %v1747_v61  ;;  %2024 = vset.pattern.permute.xlu1 %v3886_v39  ;;  %v3977_v61 = vld [vmem:[#allocation82_spill] sm:$0xff] }
 0x223   :  { %1319 = vperm.xlu1 %2024, %v3147_v45   ;;  %v825_v54 = vmul.f32 %v2959_v59, %v3977_v61  ;;  %v3978_v45 = vld [vmem:[#allocation37_spill] sm:$0xff] }
 0x224   :  { %v3227_v13 = vpop.permute.xlu1 %981  ;;  %v446_v43 = vmul.f32 %v2893_v63, %v3978_v45 }
 0x225   :  { %v857_v31 = vadd.f32 %v825_v54, %v660_v51 }
 0x226   :  { %v478_v3 = vadd.f32 %v446_v43, %v281_v14  ;;  %v3984_v14 = vld [vmem:[#allocation6_spill] sm:$0xff] }
 0x227   :  { %1383 = vperm.xlu1 %2024, %v3238_v58   ;;  %v1054_v29 = vadd.f32 %v1022_v17, %v857_v31  ;;  %v236_v28 = vmul.f32 %v3962_v47, %v3984_v14 }
 0x228   :  { %v675_v53 = vadd.f32 %v643_v27, %v478_v3  ;;  %v3985_v3 = vld [vmem:[#allocation28_spill] sm:$0xff] }
 0x229   :  { %v3245_v57 = vpop.permute.xlu1 %1110  ;;  %v1251_v30 = vadd.f32 %v1219_v56, %v1054_v29  ;;  %v433_v6 = vmul.f32 %v2893_v63, %v3985_v3 }
 0x22a   :  { %v872_v62 = vadd.f32 %v840_v2, %v675_v53  ;;  %v3986_v2 = vld [vmem:[#allocation3_spill] sm:$0xff]  ;;  %v3987_v53 = vld [vmem:[#allocation50_spill] sm:$0xff] }
 0x22b   :  { %2025 = vset.pattern.permute.xlu1 %v3906_v4  ;;  %v235_v44 = vmul.f32 %v3962_v47, %v3986_v2  ;;  %v630_v11 = vmul.f32 %v2936_v26, %v3987_v53 }
 0x22c   :  { %1576 = vperm.xlu1 %2025, %v3173_v19   ;;  %v3263_v19 = vld [vmem:[%s3796_s0 + $0xf0] sm:$0xff]  ;;  %v1069_v1 = vadd.f32 %v1037_v50, %v872_v62 }
 0x22d   :  { %v3990_v62 = vld [vmem:[#allocation16_spill] sm:$0xff] }
 0x22e   :  { %v1304_v34 = vpop.permute.xlu1 %1303  ;;  %v1266_v54 = vadd.f32 %v1234_v9, %v1069_v1  ;;  %v3991_v9 = vld [vmem:[#allocation84_spill] sm:$0xff] }
 0x22f   :  { %v1416_v40 = vmul.f32 %v3023_v15, %v1304_v34  ;;  %v3988_v34 = vld [vmem:[#allocation15_spill] sm:$0xff]  ;;  %v827_v1 = vmul.f32 %v2959_v59, %v3991_v9 }
 0x230   :  { %2026 = vset.pattern.permute.xlu1 %v3959_v25  ;;  %v1463_v51 = vadd.f32 %v1431_v0, %v1266_v54  ;;  %v3992_v0 = vld [vmem:[#allocation39_spill] sm:$0xff] }
 0x231   :  { %v1448_v21 = vadd.f32 %v1416_v40, %v1251_v30  ;;  %808 = vperm.xlu1 %2026, %v3263_v19   ;;  %v251_v30 = vmul.f32 %v3962_v47, %v3988_v34  ;;  %v3989_v40 = vld [vmem:[#allocation27_spill] sm:$0xff] }
 0x232   :  { %v3268_v5 = vpop.permute.xlu1 %1367  ;;  %v3993_v54 = vld [vmem:[#allocation51_spill] sm:$0xff] }
 0x233   :  { %v1645_v16 = vadd.f32 %v1613_v60, %v1448_v21  ;;  %v432_v60 = vmul.f32 %v2893_v63, %v3989_v40  ;;  %v250_v21 = vmul.f32 %v3962_v47, %v3990_v62 }
 0x235   :  { %v1677_v61 = vmax.f32 %v1645_v16, 0.0  ;;  %2027 = vset.pattern.permute.xlu1 %v3867_v42  ;;  %v282_v3 = vadd.f32 %v2900_v24, %v250_v21 }
 0x236   :  { %1001 = vperm.xlu1 %2027, %v3197_v22  }
 0x237   :  { %v1715_v45 = vsel %vm1703_vm0, %v1677_v61, 0.0  ;;  %v1561_v43 = vpop.permute.xlu1 %1560  ;;  %v448_v61 = vmul.f32 %v2893_v63, %v3992_v0  ;;  %v1220_v0 = vmul.f32 %v3002_v46, %v3245_v57  ;;  %v1038_v57 = vmul.f32 %v2974_v38, %v3052_v36 }
 0x238   :  { %v3274_v48 = vadd.f32 %v1715_v45, %v1714_v20  ;;  %v1628_v17 = vmul.f32 %v3045_v7, %v1561_v43  ;;  %v268_v20 = vadd.f32 %v2900_v24, %v236_v28  ;;  %v629_v45 = vmul.f32 %v2936_v26, %v3993_v54  ;;  %v3995_v28 = vld [vmem:[#allocation67_spill] sm:$0xff] }
 0x239   :  { %v4000_v54 = vld [vmem:[#allocation115_spill] sm:$0xff] }
 0x23a   :  { %v1660_v27 = vadd.f32 %v1628_v17, %v1463_v51  ;;  %2028 = vset.pattern.permute.xlu1 %v3862_v49  ;;  %v465_v10 = vadd.f32 %v433_v6, %v268_v20  ;;  %v3994_v51 = vld [vmem:[#allocation111_spill] sm:$0xff]  ;;  %v283_v17 = vadd.f32 %v2900_v24, %v251_v30  ;;  %v3997_v6 = vld [vmem:[#allocation38_spill] sm:$0xff]  ;;  %v842_v30 = vmul.f32 %v2959_v59, %v3012_v32 }
 0x23b   :  { %1130 = vperm.xlu1 %2028, %v3283_v23   ;;  %v447_v2 = vmul.f32 %v2893_v63, %v3997_v6  ;;  %v841_v32 = vmul.f32 %v2959_v59, %v4000_v54  ;;  %v4004_v54 = vld [vmem:[#allocation42_spill] sm:$0xff] }
 0x23c   :  { %v1692_v31 = vmax.f32 %v1660_v27, 0.0  ;;  %v3286_v56 = vpop.permute.xlu1 %792  ;;  %v662_v43 = vadd.f32 %v630_v11, %v465_v10  ;;  %v645_v27 = vmul.f32 %v2936_v26, %v3995_v28  ;;  %v3998_v11 = vld [vmem:[#allocation110_spill] sm:$0xff] }
 0x23d   :  { %v1023_v34 = vmul.f32 %v2974_v38, %v3998_v11 }
 0x23e   :  { %v1750_v29 = vsel %vm1703_vm0, %v1692_v31, 0.0  ;;  %v3996_v31 = vld [vmem:[#allocation79_spill] sm:$0xff] }
 0x23f   :  { %v3297_v50 = vadd.f32 %v1750_v29, %v3220_v18  ;;  %2029 = vset.pattern.permute.xlu1 %v3886_v39  ;;  %v267_v18 = vadd.f32 %v2900_v24, %v235_v44  ;;  %v826_v20 = vmul.f32 %v2959_v59, %v3996_v31  ;;  %v859_v44 = vadd.f32 %v827_v1, %v662_v43  ;;  %v1505_v43 = vpop.permute.xlu0 %1504 }
 0x240   :  { %1323 = vperm.xlu1 %2029, %v3212_v12   ;;  %v1024_v12 = vmul.f32 %v2974_v38, %v3994_v51  ;;  %v480_v29 = vadd.f32 %v448_v61, %v283_v17  ;;  %v1039_v1 = vmul.f32 %v2974_v38, %v3163_v33  ;;  %v479_v61 = vadd.f32 %v447_v2, %v282_v3  ;;  %v3354_v2 = vld [vmem:[%s3796_s0 + $0xf8] sm:$0xff] }
 0x241   :  { %v3309_v16 = vpop.permute.xlu1 %985  ;;  %v464_v14 = vadd.f32 %v432_v60, %v267_v18  ;;  %v3999_v60 = vld [vmem:[#allocation64_spill] sm:$0xff]  ;;  %v1614_v3 = vmul.f32 %v3045_v7, %v1505_v43 }
 0x242   :  { %v644_v62 = vmul.f32 %v2936_v26, %v3999_v60  ;;  %v1056_v10 = vadd.f32 %v1024_v12, %v859_v44  ;;  %v677_v21 = vadd.f32 %v645_v27, %v480_v29  ;;  %v4002_v44 = vld [vmem:[#allocation95_spill] sm:$0xff] }
 0x243   :  { %v661_v53 = vadd.f32 %v629_v45, %v464_v14  ;;  %v4001_v14 = vld [vmem:[#allocation96_spill] sm:$0xff]  ;;  %v1235_v36 = vmul.f32 %v3002_v46, %v4002_v44 }
 0x244   :  { %1387 = vperm.xlu1 %2029, %v3136_v37   ;;  %v874_v12 = vadd.f32 %v842_v30, %v677_v21  ;;  %v676_v17 = vadd.f32 %v644_v62, %v479_v61  ;;  %v1236_v33 = vmul.f32 %v3002_v46, %v4001_v14  ;;  %v4003_v62 = vld [vmem:[#allocation20_spill] sm:$0xff] }
 0x245   :  { %v858_v18 = vadd.f32 %v826_v20, %v661_v53 }
 0x246   :  { %v1115_v40 = vpop.permute.xlu1 %1114  ;;  %v1071_v27 = vadd.f32 %v1039_v1, %v874_v12  ;;  %v873_v6 = vadd.f32 %v841_v32, %v676_v17  ;;  %v451_v32 = vmul.f32 %v2893_v63, %v4004_v54  ;;  %v3382_v17 = vld [vmem:[%s3796_s0 + $0x68] sm:$0xff]  ;;  %v4014_v54 = vld [vmem:[#allocation66_spill] sm:$0xff] }
 0x247   :  { %v1221_v9 = vmul.f32 %v3002_v46, %v1115_v40  ;;  %v1055_v51 = vadd.f32 %v1023_v34, %v858_v18 }
 0x248   :  { %2030 = vset.pattern.permute.xlu1 %v3906_v4  ;;  %v1070_v29 = vadd.f32 %v1038_v57, %v873_v6  ;;  %v1268_v34 = vadd.f32 %v1236_v33, %v1071_v27  ;;  %v845_v6 = vmul.f32 %v2959_v59, %v3286_v56 }
 0x249   :  { %v3341_v45 = vadd.f32 %v1221_v9, %v1056_v10  ;;  %1580 = vperm.xlu1 %2030, %v3238_v58   ;;  %v1252_v31 = vadd.f32 %v1220_v0, %v1055_v51  ;;  %v254_v10 = vmul.f32 %v3962_v47, %v4003_v62  ;;  %v4005_v51 = vld [vmem:[#allocation5_spill] sm:$0xff]  ;;  %v4011_v62 = vld [vmem:[#allocation40_spill] sm:$0xff] }
 0x24a   :  { %v1267_v9 = vadd.f32 %v1235_v36, %v1070_v29  ;;  %v237_v12 = vmul.f32 %v3962_v47, %v4005_v51  ;;  %v4009_v36 = vld [vmem:[#allocation53_spill] sm:$0xff] }
 0x24b   :  { %v1308_v28 = vpop.permute.xlu1 %1307  ;;  %v286_v61 = vadd.f32 %v2900_v24, %v254_v10  ;;  %v631_v29 = vmul.f32 %v2936_v26, %v4009_v36  ;;  %v449_v10 = vmul.f32 %v2893_v63, %v4011_v62 }
 0x24c   :  { %v1417_v20 = vmul.f32 %v3023_v15, %v1308_v28  ;;  %v4007_v28 = vld [vmem:[#allocation18_spill] sm:$0xff]  ;;  %v269_v44 = vadd.f32 %v2900_v24, %v237_v12 }
 0x24d   :  { %2031 = vset.pattern.permute.xlu1 %v3959_v25  ;;  %v1432_v25 = vmul.f32 %v3023_v15, %v3268_v5  ;;  %v252_v27 = vmul.f32 %v3962_v47, %v4007_v28 }
 0x24e   :  { %v1449_v58 = vadd.f32 %v1417_v20, %v1252_v31  ;;  %812 = vperm.xlu1 %2031, %v3354_v2   ;;  %v4008_v31 = vld [vmem:[#allocation29_spill] sm:$0xff] }
 0x24f   :  { %v1372_v53 = vpop.permute.xlu1 %1371  ;;  %v1464_v1 = vadd.f32 %v1432_v25, %v1267_v9  ;;  %v434_v20 = vmul.f32 %v2893_v63, %v4008_v31  ;;  %v4010_v25 = vld [vmem:[#allocation81_spill] sm:$0xff] }
 0x250   :  { %v1646_v11 = vadd.f32 %v1614_v3, %v1449_v58  ;;  %v1433_v30 = vmul.f32 %v3023_v15, %v1372_v53  ;;  %v483_v3 = vadd.f32 %v451_v32, %v286_v61  ;;  %v828_v56 = vmul.f32 %v2959_v59, %v4010_v25  ;;  %v4012_v9 = vld [vmem:[#allocation101_spill] sm:$0xff] }
 0x251   :  { %v646_v32 = vmul.f32 %v2936_v26, %v4014_v54 }
 0x252   :  { %v1678_v40 = vmax.f32 %v1646_v11, 0.0  ;;  %v3362_v60 = vadd.f32 %v1433_v30, %v1268_v34  ;;  %2032 = vset.pattern.permute.xlu1 %v3867_v42  ;;  %v284_v34 = vadd.f32 %v2900_v24, %v252_v27  ;;  %v466_v30 = vadd.f32 %v434_v20, %v269_v44 }
 0x253   :  { %1005 = vperm.xlu1 %2032, %v3263_v19   ;;  %v1040_v20 = vmul.f32 %v2974_v38, %v3227_v13 }
 0x254   :  { %v1717_v21 = vsel %vm1703_vm0, %v1678_v40, 0.0  ;;  %v1565_v18 = vpop.permute.xlu1 %1564  ;;  %v481_v12 = vadd.f32 %v449_v10, %v284_v34  ;;  %v3437_v34 = vld [vmem:[%s3796_s0 + $0x78] sm:$0xff] }
 0x255   :  { %v3370_v0 = vadd.f32 %v1717_v21, %v3274_v48  ;;  %v1629_v5 = vmul.f32 %v3045_v7, %v1565_v18  ;;  %v4006_v48 = vld [vmem:[#allocation68_spill] sm:$0xff]  ;;  %v1239_v21 = vmul.f32 %v3002_v46, %v4012_v9  ;;  %v4016_v9 = vld [vmem:[#allocation19_spill] sm:$0xff] }
 0x256   :  { %v648_v14 = vmul.f32 %v2936_v26, %v4006_v48  ;;  %v843_v48 = vmul.f32 %v2959_v59, %v3151_v55  ;;  %v678_v31 = vadd.f32 %v646_v32, %v481_v12  ;;  %v4015_v55 = vld [vmem:[#allocation97_spill] sm:$0xff] }
 0x257   :  { %v1661_v43 = vadd.f32 %v1629_v5, %v1464_v1  ;;  %2033 = vset.pattern.permute.xlu1 %v3862_v49  ;;  %v663_v1 = vadd.f32 %v631_v29, %v466_v30  ;;  %v4013_v5 = vld [vmem:[#allocation112_spill] sm:$0xff]  ;;  %v1237_v44 = vmul.f32 %v3002_v46, %v4015_v55  ;;  %v4022_v55 = vld [vmem:[#allocation17_spill] sm:$0xff] }
 0x258   :  { %1134 = vperm.xlu1 %2033, %v3382_v17   ;;  %v680_v11 = vadd.f32 %v648_v14, %v483_v3  ;;  %v1025_v61 = vmul.f32 %v2974_v38, %v4013_v5 }
 0x259   :  { %v1693_v33 = vmax.f32 %v1661_v43, 0.0  ;;  %v3387_v57 = vpop.permute.xlu1 %796  ;;  %v860_v51 = vadd.f32 %v828_v56, %v663_v1  ;;  %v4017_v1 = vld [vmem:[#allocation8_spill] sm:$0xff] }
 0x25a   :  { %v238_v5 = vmul.f32 %v3962_v47, %v4017_v1  ;;  %v844_v1 = vmul.f32 %v2959_v59, %v3217_v8  ;;  %v4028_v8 = vld [vmem:[#allocation99_spill] sm:$0xff] }
 0x25b   :  { %v1752_v58 = vsel %vm1703_vm0, %v1693_v33, 0.0  ;;  %v1057_v28 = vadd.f32 %v1025_v61, %v860_v51  ;;  %v4018_v61 = vld [vmem:[#allocation43_spill] sm:$0xff] }
 0x25c   :  { %v3400_v53 = vadd.f32 %v1752_v58, %v3297_v50  ;;  %2035 = vset.pattern.permute.xlu1 %v3886_v39  ;;  %v877_v50 = vadd.f32 %v845_v6, %v680_v11  ;;  %v875_v6 = vadd.f32 %v843_v48, %v678_v31  ;;  %v452_v54 = vmul.f32 %v2893_v63, %v4018_v61  ;;  %v4019_v51 = vld [vmem:[#allocation71_spill] sm:$0xff] }
 0x25d   :  { %1327 = vperm.xlu1 %2035, %v3283_v23   ;;  %v649_v12 = vmul.f32 %v2936_v26, %v4019_v51 }
 0x25e   :  { %v990_v40 = vpop.permute.xlu1 %989  ;;  %v1072_v36 = vadd.f32 %v1040_v20, %v875_v6  ;;  %v846_v20 = vmul.f32 %v2959_v59, %v3387_v57 }
 0x25f   :  { %v1042_v18 = vmul.f32 %v2974_v38, %v990_v40 }
 0x260   :  { %v1269_v25 = vadd.f32 %v1237_v44, %v1072_v36  ;;  %v253_v44 = vmul.f32 %v3962_v47, %v4022_v55  ;;  %v3519_v55 = vld [vmem:[%s3797_s1] ss:$0 sm:$0xff] }
 0x261   :  { %v1074_v43 = vadd.f32 %v1042_v18, %v877_v50  ;;  %1391 = vperm.xlu1 %2035, %v3119_v41   ;;  %v1509_v41 = vpop.permute.xlu0 %1508 }
 0x262   :  { %v1615_v11 = vmul.f32 %v3045_v7, %v1509_v41  ;;  %v4021_v41 = vld [vmem:[#allocation52_spill] sm:$0xff] }
 0x263   :  { %v1119_v14 = vpop.permute.xlu1 %1118  ;;  %v3419_v33 = vadd.f32 %v1239_v21, %v1074_v43  ;;  %v255_v21 = vmul.f32 %v3962_v47, %v4016_v9  ;;  %v632_v6 = vmul.f32 %v2936_v26, %v4021_v41  ;;  %v285_v47 = vadd.f32 %v2900_v24, %v253_v44  ;;  %v4029_v44 = vld [vmem:[#allocation22_spill] sm:$0xff] }
 0x264   :  { %v1222_v27 = vmul.f32 %v3002_v46, %v1119_v14  ;;  %v270_v14 = vadd.f32 %v2900_v24, %v238_v5 }
 0x265   :  { %2036 = vset.pattern.permute.xlu1 %v3906_v4  ;;  %v287_v43 = vadd.f32 %v2900_v24, %v255_v21 }
 0x266   :  { %v3425_v3 = vadd.f32 %v1222_v27, %v1057_v28  ;;  %1584 = vperm.xlu1 %2036, %v3136_v37   ;;  %v4020_v28 = vld [vmem:[#allocation30_spill] sm:$0xff] }
 0x267   :  { %v435_v27 = vmul.f32 %v2893_v63, %v4020_v28  ;;  %v484_v31 = vadd.f32 %v452_v54, %v287_v43 }
 0x268   :  { %v1312_v58 = vpop.permute.xlu1 %1311 }
 0x269   :  { %v1418_v29 = vmul.f32 %v3023_v15, %v1312_v58  ;;  %v681_v36 = vadd.f32 %v649_v12, %v484_v31 }
 0x26a   :  { %2037 = vset.pattern.permute.xlu1 %v3867_v42  ;;  %v2068_v42 = vld [vmem:[%s3796_s0 + $0x70] sm:$0xff] }
 0x26b   :  { %v1450_v13 = vadd.f32 %v1418_v29, %v3341_v45  ;;  %945 = vperm.xlu1 %2037, %v3437_v34   ;;  %v467_v29 = vadd.f32 %v435_v27, %v270_v14 }
 0x26c   :  { %v1376_v37 = vpop.permute.xlu1 %1375 }
 0x26d   :  { %v1647_v30 = vadd.f32 %v1615_v11, %v1450_v13  ;;  %v1434_v56 = vmul.f32 %v3023_v15, %v1376_v37  ;;  %v4023_v11 = vld [vmem:[#allocation86_spill] sm:$0xff]  ;;  %v4024_v37 = vld [vmem:[#allocation41_spill] sm:$0xff] }
 0x26e   :  { %v829_v57 = vmul.f32 %v2959_v59, %v4023_v11 }
 0x26f   :  { %v1679_v40 = vmax.f32 %v1647_v30, 0.0  ;;  %v3441_v62 = vadd.f32 %v1434_v56, %v1269_v25  ;;  %2039 = vset.pattern.permute.xlu1 %v3862_v49  ;;  %v450_v30 = vmul.f32 %v2893_v63, %v4024_v37  ;;  %v878_v25 = vadd.f32 %v846_v20, %v681_v36 }
 0x270   :  { %1138 = vperm.xlu1 %2039, %v2068_v42  }
 0x271   :  { %v1719_v45 = vsel %vm1703_vm0, %v1679_v40, 0.0  ;;  %v1569_v10 = vpop.permute.xlu1 %1568  ;;  %v664_v40 = vadd.f32 %v632_v6, %v467_v29 }
 0x272   :  { %v3451_v50 = vadd.f32 %v1719_v45, %v3370_v0  ;;  %v1630_v18 = vmul.f32 %v3045_v7, %v1569_v10  ;;  %v4027_v10 = vld [vmem:[#allocation102_spill] sm:$0xff] }
 0x273   :  { %v1240_v9 = vmul.f32 %v3002_v46, %v4027_v10  ;;  %v861_v63 = vadd.f32 %v829_v57, %v664_v40  ;;  %v4031_v40 = vld [vmem:[#allocation7_spill] sm:$0xff] }
 0x274   :  { %v1662_v32 = vadd.f32 %v1630_v18, %v3362_v60  ;;  %1202 = vperm.xlu1 %2039, %v3263_v19   ;;  %v482_v18 = vadd.f32 %v450_v30, %v285_v47  ;;  %v3536_v30 = vld [vmem:[%s3797_s1 + $0x1] ss:$0 sm:$0xff] }
 0x275   :  { %v4032_v47 = vld [vmem:[#allocation70_spill] sm:$0xff] }
 0x276   :  { %v1694_v48 = vmax.f32 %v1662_v32, 0.0  ;;  %v3463_v0 = vpop.permute.xlu1 %800 }
 0x278   :  { %v1754_v60 = vsel %vm1703_vm0, %v1694_v48, 0.0  ;;  %2040 = vset.pattern.permute.xlu1 %v3886_v39  ;;  %v1238_v48 = vmul.f32 %v3002_v46, %v4028_v8  ;;  %v4036_v8 = vld [vmem:[#allocation116_spill] sm:$0xff] }
 0x279   :  { %v3475_v58 = vadd.f32 %v1754_v60, %v3400_v53  ;;  %1395 = vperm.xlu1 %2040, %v3197_v22   ;;  %v4025_v53 = vld [vmem:[#allocation114_spill] sm:$0xff]  ;;  %v4026_v22 = vld [vmem:[#allocation69_spill] sm:$0xff] }
 0x27a   :  { %v1026_v42 = vmul.f32 %v2974_v38, %v4025_v53  ;;  %v647_v45 = vmul.f32 %v2936_v26, %v4026_v22  ;;  %v1041_v26 = vmul.f32 %v2974_v38, %v3309_v16  ;;  %v239_v53 = vmul.f32 %v3519_v55, %v4031_v40  ;;  %v4039_v40 = vld [vmem:[#allocation10_spill] sm:$0xff] }
 0x27b   :  { %v994_v13 = vpop.permute.xlu1 %993 }
 0x27c   :  { %v1043_v56 = vmul.f32 %v2974_v38, %v994_v13  ;;  %v1058_v54 = vadd.f32 %v1026_v42, %v861_v63  ;;  %v679_v32 = vadd.f32 %v647_v45, %v482_v18  ;;  %v3530_v13 = vld [vmem:[%s3798_s2] ss:$0 sm:$0xff]  ;;  %v3547_v42 = vld [vmem:[%s3797_s1 + $0x2] ss:$0 sm:$0xff] }
 0x27d   :  { %2041 = vset.pattern.permute.xlu1 %v3906_v4  ;;  %v650_v22 = vmul.f32 %v3547_v42, %v4032_v47  ;;  %v271_v18 = vadd.f32 %v3530_v13, %v239_v53  ;;  %v4040_v53 = vld [vmem:[#allocation45_spill] sm:$0xff] }
 0x27e   :  { %v1075_v21 = vadd.f32 %v1043_v56, %v878_v25  ;;  %1524 = vperm.xlu1 %2041, %v3283_v23   ;;  %v1513_v23 = vpop.permute.xlu0 %1512  ;;  %v876_v51 = vadd.f32 %v844_v1, %v679_v32  ;;  %v4030_v25 = vld [vmem:[#allocation44_spill] sm:$0xff]  ;;  %v4034_v1 = vld [vmem:[#allocation55_spill] sm:$0xff] }
 0x27f   :  { %v1616_v27 = vmul.f32 %v3045_v7, %v1513_v23  ;;  %v453_v56 = vmul.f32 %v3536_v30, %v4030_v25 }
 0x280   :  { %v1123_v5 = vpop.permute.xlu1 %1122  ;;  %v3496_v61 = vadd.f32 %v1240_v9, %v1075_v21  ;;  %v1073_v14 = vadd.f32 %v1041_v26, %v876_v51  ;;  %v4033_v9 = vld [vmem:[#allocation31_spill] sm:$0xff]  ;;  %v3565_v26 = vld [vmem:[%s3797_s1 + $0x3] ss:$0 sm:$0xff] }
 0x281   :  { %v1223_v24 = vmul.f32 %v3002_v46, %v1123_v5  ;;  %v436_v21 = vmul.f32 %v3536_v30, %v4033_v9  ;;  %v633_v5 = vmul.f32 %v3547_v42, %v4034_v1 }
 0x282   :  { %2042 = vset.pattern.permute.xlu1 %v3862_v49  ;;  %v1270_v20 = vadd.f32 %v1238_v48, %v1073_v14 }
 0x283   :  { %v3502_v43 = vadd.f32 %v1223_v24, %v1058_v54  ;;  %1142 = vperm.xlu1 %2042, %v3437_v34   ;;  %v468_v32 = vadd.f32 %v436_v21, %v271_v18  ;;  %v1781_v18 = vld [vmem:[%s3799_s3 + $0x8] sm:$0xff] }
 0x285   :  { %v1316_v12 = vpop.permute.xlu1 %1315 }
 0x286   :  { %v1419_v28 = vmul.f32 %v3023_v15, %v1316_v12  ;;  %v665_v12 = vadd.f32 %v633_v5, %v468_v32  ;;  %v1783_v32 = vld [vmem:[%s3799_s3 + $0x18] sm:$0xff] }
 0x287   :  { %1206 = vperm.xlu1 %2042, %v3354_v2  }
 0x288   :  { %v1451_v16 = vadd.f32 %v1419_v28, %v3425_v3  ;;  %v256_v3 = vmul.f32 %v3519_v55, %v4029_v44 }
 0x289   :  { %v1380_v49 = vpop.permute.xlu1 %1379 }
 0x28a   :  { %v1648_v31 = vadd.f32 %v1616_v27, %v1451_v16  ;;  %v1435_v60 = vmul.f32 %v3023_v15, %v1380_v49  ;;  %v288_v37 = vadd.f32 %v3530_v13, %v256_v3 }
 0x28b   :  { %2044 = vset.pattern.permute.xlu1 %v3886_v39 }
 0x28c   :  { %v1680_v41 = vmax.f32 %v1648_v31, 0.0  ;;  %v3513_v6 = vadd.f32 %v1435_v60, %v1270_v20  ;;  %1399 = vperm.xlu1 %2044, %v3263_v19   ;;  %v485_v63 = vadd.f32 %v453_v56, %v288_v37 }
 0x28e   :  { %v1721_v36 = vsel %vm1703_vm0, %v1680_v41, 0.0  ;;  %v1573_v29 = vpop.permute.xlu1 %1572  ;;  %v682_v24 = vadd.f32 %v650_v22, %v485_v63  ;;  %v4041_v22 = vld [vmem:[#allocation73_spill] sm:$0xff]  ;;  %v4042_v63 = vld [vmem:[#allocation32_spill] sm:$0xff] }
 0x28f   :  { %v1722_v11 = vadd.f32 %v1721_v36, %v3451_v50  ;;  %v1631_v57 = vmul.f32 %v3045_v7, %v1573_v29 }
 0x290   :  { %2045 = vset.pattern.permute.xlu1 %v3906_v4 }
 0x291   :  { %v1663_v50 = vadd.f32 %v1631_v57, %v3441_v62  ;;  %1528 = vperm.xlu1 %2045, %v3382_v17   ;;  %v847_v17 = vmul.f32 %v2959_v59, %v3463_v0  ;;  %v4035_v59 = vld [vmem:[#allocation83_spill] sm:$0xff] }
 0x292   :  { %v830_v0 = vmul.f32 %v3565_v26, %v4035_v59 }
 0x293   :  { %v1695_v45 = vmax.f32 %v1663_v50, 0.0  ;;  %v805_v10 = vpop.permute.xlu1 %804  ;;  %v879_v23 = vadd.f32 %v847_v17, %v682_v24  ;;  %v1782_v24 = vld [vmem:[%s3799_s3 + $0x10] sm:$0xff] }
 0x294   :  { %v862_v28 = vadd.f32 %v830_v0, %v665_v12  ;;  %v2088_v12 = vmov 0.0  }
 0x295   :  { %v1756_v62 = vsel %vm1703_vm0, %v1695_v45, 0.0  ;;  %2046 = vset.pattern.permute.xlu1 %v3886_v39  ;;  %v651_v45 = vmul.f32 %v3547_v42, %v4041_v22  ;;  %1946 = vmatprep.mubr.msk.f32.mxu0 %vm2087_vm1, %v2088_v12  ;;  %1903 = vst [vmem:[%s3800_s5] sm:$0xff] %v2088_v12  ;;  %1904 = vst [vmem:[%s3801_s6] sm:$0xff] %v2088_v12  ;;  %v4047_v22 = vld [vmem:[#allocation23_spill] sm:$0xff] }
 0x296   :  { %v1757_v54 = vadd.f32 %v1756_v62, %v3475_v58  ;;  %1339 = vperm.xlu1 %2046, %v3437_v34   ;;  %v1027_v58 = vmul.f32 %v2974_v38, %v4036_v8  ;;  %v4037_v34 = vld [vmem:[#allocation103_spill] sm:$0xff]  ;;  %v848_v62 = vmul.f32 %v3565_v26, %v805_v10  ;;  %v4043_v10 = vld [vmem:[#allocation54_spill] sm:$0xff] }
 0x297   :  { %v1241_v48 = vmul.f32 %v3002_v46, %v4037_v34  ;;  %v634_v59 = vmul.f32 %v3547_v42, %v4043_v10 }
 0x298   :  { %v998_v39 = vpop.permute.xlu1 %997  ;;  %v1059_v49 = vadd.f32 %v1027_v58, %v862_v28  ;;  %v4044_v58 = vld [vmem:[#allocation88_spill] sm:$0xff] }
 0x299   :  { %v1044_v51 = vmul.f32 %v2974_v38, %v998_v39  ;;  %v1517_v38 = vpop.permute.xlu0 %1516  ;;  %v2086_v39 = vmov 0.0|0.0  }
 0x29a   :  { %1403 = vperm.xlu1 %2046, %v3354_v2   ;;  %v1617_v44 = vmul.f32 %v3045_v7, %v1517_v38  ;;  %1949 = vmatprep.subr.bf16.mxu0 %v2086_v39  ;;  %v3644_v38 = vld [vmem:[%s3797_s1 + $0x5] ss:$0 sm:$0xff] }
 0x29b   :  { %v1076_v14 = vadd.f32 %v1044_v51, %v879_v23  ;;  %v1953_v51 = vpack.c.bf16 %v1783_v32, %v1782_v24 }
 0x29d   :  { %v1127_v27 = vpop.permute.xlu1 %1126  ;;  %v3575_v16 = vadd.f32 %v1241_v48, %v1076_v14  ;;  %v3636_v14 = vld [vmem:[%s3797_s1 + $0x4] ss:$0 sm:$0xff] }
 0x29e   :  { %v1224_v31 = vmul.f32 %v3002_v46, %v1127_v27  ;;  %2047 = vset.pattern.permute.xlu1 %v3906_v4 }
 0x29f   :  { %1596 = vperm.xlu1 %2047, %v3263_v19   ;;  %v4038_v19 = vld [vmem:[#allocation21_spill] sm:$0xff] }
 0x2a0   :  { %v3580_v20 = vadd.f32 %v1224_v31, %v1059_v49  ;;  %v257_v37 = vmul.f32 %v3519_v55, %v4038_v19  ;;  %v4045_v49 = vld [vmem:[#allocation118_spill] sm:$0xff] }
 0x2a1   :  { %v1028_v31 = vmul.f32 %v3636_v14, %v4045_v49 }
 0x2a2   :  { %v1320_v60 = vpop.permute.xlu1 %1319 }
 0x2a3   :  { %v1420_v41 = vmul.f32 %v3023_v15, %v1320_v60  ;;  %1600 = vperm.xlu1 %2047, %v3354_v2   ;;  %v4046_v60 = vld [vmem:[#allocation104_spill] sm:$0xff] }
 0x2a5   :  { %v1452_v3 = vadd.f32 %v1420_v41, %v3502_v43  ;;  %v240_v43 = vmul.f32 %v3519_v55, %v4039_v40  ;;  %v1242_v41 = vmul.f32 %v3644_v38, %v4046_v60  ;;  %v3660_v40 = vld [vmem:[%s3797_s1 + $0x7] ss:$0 sm:$0xff] }
 0x2a6   :  { %v1384_v36 = vpop.permute.xlu1 %1383 }
 0x2a7   :  { %v1649_v29 = vadd.f32 %v1617_v44, %v1452_v3  ;;  %v1436_v46 = vmul.f32 %v3023_v15, %v1384_v36  ;;  %v454_v15 = vmul.f32 %v3536_v30, %v4040_v53 }
 0x2a9   :  { %v1681_v57 = vmax.f32 %v1649_v29, 0.0  ;;  %v3588_v4 = vadd.f32 %v1436_v46, %v3419_v33  ;;  %v289_v33 = vadd.f32 %v3530_v13, %v257_v37  ;;  %v1521_v37 = vpop.permute.xlu0 %1520 }
 0x2ab   :  { %v1723_v25 = vsel %vm1703_vm0, %v1681_v57, 0.0  ;;  %v1577_v56 = vpop.permute.xlu1 %1576  ;;  %v486_v17 = vadd.f32 %v454_v15, %v289_v33 }
 0x2ac   :  { %v3593_v50 = vadd.f32 %v1723_v25, %v1722_v11  ;;  %v1632_v2 = vmul.f32 %v3045_v7, %v1577_v56  ;;  %v272_v11 = vadd.f32 %v3530_v13, %v240_v43  ;;  %v437_v7 = vmul.f32 %v3536_v30, %v4042_v63  ;;  %v3654_v56 = vld [vmem:[%s3797_s1 + $0x6] ss:$0 sm:$0xff]  ;;  %v4048_v63 = vld [vmem:[#allocation47_spill] sm:$0xff] }
 0x2ad   :  { %v683_v23 = vadd.f32 %v651_v45, %v486_v17  ;;  %v1618_v43 = vmul.f32 %v3660_v40, %v1521_v37  ;;  %v259_v45 = vmul.f32 %v3519_v55, %v4047_v22 }
 0x2ae   :  { %v1664_v47 = vadd.f32 %v1632_v2, %v3513_v6  ;;  %v1780_v6 = vld [vmem:[%s3799_s3] sm:$0xff]  ;;  %v469_v8 = vadd.f32 %v437_v7, %v272_v11  ;;  %v456_v7 = vmul.f32 %v3536_v30, %v4048_v63 }
 0x2af   :  { %v1950_v5 = vpack.c.bf16 %v1781_v18, %v1780_v6  ;;  %v880_v48 = vadd.f32 %v848_v62, %v683_v23  ;;  %v291_v18 = vadd.f32 %v3530_v13, %v259_v45 }
 0x2b0   :  { %v1696_v9 = vmax.f32 %v1664_v47, 0.0  ;;  %v3604_v21 = vpop.permute.xlu1 %808  ;;  %v666_v27 = vadd.f32 %v634_v59, %v469_v8 }
 0x2b1   :  { %1951 = vmatpush3.bf16.msra.mxu0 %v1950_v5  ;;  %v488_v32 = vadd.f32 %v456_v7, %v291_v18  ;;  %v4052_v7 = vld [vmem:[#allocation34_spill] sm:$0xff]  ;;  %v4053_v18 = vld [vmem:[#allocation9_spill] sm:$0xff] }
 0x2b2   :  { %v1758_v1 = vsel %vm1703_vm0, %v1696_v9, 0.0  ;;  %1952 = vmatprep.subr.bf16.mxu0 %v2086_v39 }
 0x2b3   :  { %v1759_v0 = vadd.f32 %v1758_v1, %v1757_v54  ;;  %v831_v54 = vmul.f32 %v3565_v26, %v4044_v58  ;;  %v4049_v1 = vld [vmem:[#allocation75_spill] sm:$0xff] }
 0x2b4   :  { %v653_v5 = vmul.f32 %v3547_v42, %v4049_v1  ;;  %v241_v1 = vmul.f32 %v3519_v55, %v4053_v18 }
 0x2b5   :  { %v1002_v34 = vpop.permute.xlu1 %1001  ;;  %1954 = vmatpush3.bf16.msra.mxu0 %v1953_v51  ;;  %v863_v3 = vadd.f32 %v831_v54, %v666_v27  ;;  %v4050_v51 = vld [vmem:[#allocation124_spill] sm:$0xff] }
 0x2b6   :  { %v1045_v28 = vmul.f32 %v3636_v14, %v1002_v34  ;;  %v685_v59 = vadd.f32 %v653_v5, %v488_v32  ;;  %v4054_v32 = vld [vmem:[#allocation56_spill] sm:$0xff] }
 0x2b7   :  { %v1060_v46 = vadd.f32 %v1028_v31, %v863_v3 }
 0x2b8   :  { %v1077_v44 = vadd.f32 %v1045_v28, %v880_v48  ;;  %v1589_v28 = vpop.permute.xlu0 %1588 }
 0x2b9   :  { %v1635_v49 = vmul.f32 %v3660_v40, %v1589_v28 }
 0x2ba   :  { %v1131_v36 = vpop.permute.xlu1 %1130  ;;  %v1274_v29 = vadd.f32 %v1242_v41, %v1077_v44 }
 0x2bb   :  { %v1225_v57 = vmul.f32 %v3644_v38, %v1131_v36 }
 0x2bc   :  { %v1593_v45 = vpop.permute.xlu0 %1592 }
 0x2bd   :  { %v3649_v19 = vadd.f32 %v1225_v57, %v1060_v46 }
 0x2bf   :  { %v1324_v25 = vpop.permute.xlu1 %1323 }
 0x2c0   :  { %v1421_v2 = vmul.f32 %v3654_v56, %v1324_v25 }
 0x2c2   :  { %v1453_v53 = vadd.f32 %v1421_v2, %v3580_v20 }
 0x2c3   :  { %v1388_v15 = vpop.permute.xlu1 %1387 }
 0x2c4   :  { %v1650_v47 = vadd.f32 %v1618_v43, %v1453_v53  ;;  %v1437_v33 = vmul.f32 %v3654_v56, %v1388_v15 }
 0x2c6   :  { %v1682_v9 = vmax.f32 %v1650_v47, 0.0  ;;  %v1469_v11 = vadd.f32 %v1437_v33, %v3496_v61 }
 0x2c8   :  { %v1725_v17 = vsel %vm1703_vm0, %v1682_v9, 0.0  ;;  %v1581_v62 = vpop.permute.xlu1 %1580  ;;  %v1636_v9 = vmul.f32 %v3660_v40, %v1593_v45 }
 0x2c9   :  { %v3672_v6 = vadd.f32 %v1725_v17, %v3593_v50  ;;  %v1633_v20 = vmul.f32 %v3660_v40, %v1581_v62  ;;  %v1047_v50 = vmul.f32 %v3636_v14, %v4050_v51  ;;  %v439_v17 = vmul.f32 %v3536_v30, %v4052_v7  ;;  %v4056_v51 = vld [vmem:[#allocation89_spill] sm:$0xff] }
 0x2cb   :  { %v1665_v24 = vadd.f32 %v1633_v20, %v3588_v4 }
 0x2cd   :  { %v1697_v61 = vmax.f32 %v1665_v24, 0.0  ;;  %v813_v10 = vpop.permute.xlu1 %812 }
 0x2ce   :  { %v850_v39 = vmul.f32 %v3565_v26, %v813_v10 }
 0x2cf   :  { %v1760_v23 = vsel %vm1703_vm0, %v1697_v61, 0.0  ;;  %v636_v61 = vmul.f32 %v3547_v42, %v4054_v32 }
 0x2d0   :  { %v1761_v12 = vadd.f32 %v1760_v23, %v1759_v0  ;;  %v882_v8 = vadd.f32 %v850_v39, %v685_v59  ;;  %v4055_v59 = vld [vmem:[#allocation33_spill] sm:$0xff] }
 0x2d2   :  { %v3683_v58 = vpop.permute.xlu1 %1005  ;;  %v3685_v54 = vadd.f32 %v1047_v50, %v882_v8  ;;  %v833_v50 = vmul.f32 %v3565_v26, %v4056_v51  ;;  %v273_v8 = vadd.f32 %v3530_v13, %v241_v1  ;;  %v4064_v1 = vld [vmem:[#allocation59_spill] sm:$0xff] }
 0x2d7   :  { %v1135_v34 = vpop.permute.xlu1 %1134 }
 0x2dc   :  { %v1328_v48 = vpop.permute.xlu1 %1327 }
 0x2dd   :  { %v1422_v22 = vmul.f32 %v3654_v56, %v1328_v48 }
 0x2df   :  { %v1454_v5 = vadd.f32 %v1422_v22, %v3649_v19 }
 0x2e0   :  { %v1392_v4 = vpop.permute.xlu1 %1391 }
 0x2e1   :  { %v1438_v27 = vmul.f32 %v3654_v56, %v1392_v4 }
 0x2e3   :  { %v1470_v31 = vadd.f32 %v1438_v27, %v3575_v16  ;;  %v4051_v16 = vld [vmem:[#allocation12_spill] sm:$0xff]  ;;  %v4057_v27 = vld [vmem:[#allocation57_spill] sm:$0xff] }
 0x2e4   :  { %v242_v47 = vmul.f32 %v3519_v55, %v4051_v16 }
 0x2e5   :  { %v1585_v60 = vpop.permute.xlu1 %1584  ;;  %v1667_v41 = vadd.f32 %v1635_v49, %v1470_v31  ;;  %v635_v49 = vmul.f32 %v3547_v42, %v4057_v27  ;;  %v4058_v31 = vld [vmem:[#allocation122_spill] sm:$0xff] }
 0x2e6   :  { %v1634_v44 = vmul.f32 %v3660_v40, %v1585_v60  ;;  %v274_v63 = vadd.f32 %v3530_v13, %v242_v47  ;;  %v1030_v60 = vmul.f32 %v3636_v14, %v4058_v31 }
 0x2e7   :  { %v1699_v3 = vmax.f32 %v1667_v41, 0.0 }
 0x2e8   :  { %v1666_v0 = vadd.f32 %v1634_v44, %v1469_v11  ;;  %v471_v23 = vadd.f32 %v439_v17, %v274_v63  ;;  %v4062_v63 = vld [vmem:[#allocation35_spill] sm:$0xff] }
 0x2e9   :  { %v1764_v25 = vsel %vm1703_vm0, %v1699_v3, 0.0  ;;  %v440_v7 = vmul.f32 %v3536_v30, %v4062_v63 }
 0x2ea   :  { %v1698_v36 = vmax.f32 %v1666_v0, 0.0  ;;  %v3691_v46 = vpop.permute.xlu1 %945  ;;  %v668_v28 = vadd.f32 %v636_v61, %v471_v23  ;;  %v4059_v0 = vld [vmem:[#allocation85_spill] sm:$0xff] }
 0x2eb   :  { %v832_v3 = vmul.f32 %v3565_v26, %v4059_v0 }
 0x2ec   :  { %v1762_v57 = vsel %vm1703_vm0, %v1698_v36, 0.0  ;;  %v865_v36 = vadd.f32 %v833_v50, %v668_v28  ;;  %v4066_v50 = vld [vmem:[#allocation46_spill] sm:$0xff] }
 0x2ed   :  { %v1763_v37 = vadd.f32 %v1762_v57, %v1761_v12 }
 0x2ee   :  { %v1062_v47 = vadd.f32 %v1030_v60, %v865_v36 }
 0x2ef   :  { %v1765_v2 = vadd.f32 %v1764_v25, %v1763_v37  ;;  %v1139_v43 = vpop.permute.xlu1 %1138 }
 0x2f0   :  { %v1227_v57 = vmul.f32 %v3644_v38, %v1139_v43 }
 0x2f3   :  { %v3695_v53 = vpop.permute.xlu1 %1202 }
 0x2f8   :  { %v1396_v15 = vpop.permute.xlu1 %1395 }
 0x2f9   :  { %v1439_v33 = vmul.f32 %v3654_v56, %v1396_v15  ;;  %v4060_v15 = vld [vmem:[#allocation120_spill] sm:$0xff] }
 0x2fa   :  { %v1029_v16 = vmul.f32 %v3636_v14, %v4060_v15 }
 0x2fb   :  { %v1471_v11 = vadd.f32 %v1439_v33, %v1274_v29  ;;  %v438_v29 = vmul.f32 %v3536_v30, %v4055_v59  ;;  %v4061_v33 = vld [vmem:[#allocation11_spill] sm:$0xff] }
 0x2fc   :  { %v243_v22 = vmul.f32 %v3519_v55, %v4061_v33 }
 0x2fd   :  { %v1668_v62 = vadd.f32 %v1636_v9, %v1471_v11  ;;  %v1525_v20 = vpop.permute.xlu1 %1524  ;;  %v470_v41 = vadd.f32 %v438_v29, %v273_v8  ;;  %v1226_v9 = vmul.f32 %v3644_v38, %v1135_v34  ;;  %v1259_v11 = vadd.f32 %v1227_v57, %v1062_v47  ;;  %v1533_v29 = vpop.permute.xlu0 %1532 }
 0x2fe   :  { %v1619_v24 = vmul.f32 %v3660_v40, %v1525_v20  ;;  %v4063_v20 = vld [vmem:[#allocation24_spill] sm:$0xff]  ;;  %v1423_v34 = vmul.f32 %v3654_v56, %v2993_v52 }
 0x2ff   :  { %v1700_v10 = vmax.f32 %v1668_v62, 0.0  ;;  %v275_v62 = vadd.f32 %v3530_v13, %v243_v22  ;;  %v258_v18 = vmul.f32 %v3519_v55, %v4063_v20  ;;  %v1031_v55 = vmul.f32 %v3636_v14, %v3691_v46 }
 0x300   :  { %v1651_v39 = vadd.f32 %v1619_v24, %v1454_v5  ;;  %v637_v5 = vmul.f32 %v3547_v42, %v4064_v1  ;;  %v849_v46 = vmul.f32 %v3565_v26, %v3604_v21 }
 0x301   :  { %v1766_v12 = vsel %vm1703_vm0, %v1700_v10, 0.0  ;;  %v472_v61 = vadd.f32 %v440_v7, %v275_v62  ;;  %v4065_v10 = vld [vmem:[#allocation87_spill] sm:$0xff] }
 0x302   :  { %v1683_v48 = vmax.f32 %v1651_v39, 0.0  ;;  %v1143_v19 = vpop.permute.xlu1 %1142  ;;  %v3717_v4 = vadd.f32 %v1766_v12, %v1765_v2  ;;  %v667_v2 = vadd.f32 %v635_v49, %v470_v41  ;;  %v834_v59 = vmul.f32 %v3565_v26, %v4065_v10  ;;  %v4067_v49 = vld [vmem:[#allocation72_spill] sm:$0xff] }
 0x303   :  { %v290_v39 = vadd.f32 %v3530_v13, %v258_v18  ;;  %v669_v23 = vadd.f32 %v637_v5, %v472_v61  ;;  %v455_v12 = vmul.f32 %v3536_v30, %v4066_v50  ;;  %v1228_v27 = vmul.f32 %v3644_v38, %v1143_v19 }
 0x304   :  { %v1727_v44 = vsel %vm1703_vm0, %v1683_v48, 0.0  ;;  %v864_v45 = vadd.f32 %v832_v3, %v667_v2  ;;  %v652_v31 = vmul.f32 %v3547_v42, %v4067_v49  ;;  %v1046_v19 = vmul.f32 %v3636_v14, %v3683_v58 }
 0x305   :  { %v1728_v37 = vadd.f32 %v1727_v44, %v3672_v6  ;;  %v1424_v6 = vmul.f32 %v3654_v56, %v3027_v35  ;;  %v1621_v35 = vmul.f32 %v3660_v40, %v1533_v29  ;;  %v866_v28 = vadd.f32 %v834_v59, %v669_v23  ;;  %v1537_v44 = vpop.permute.xlu0 %1536 }
 0x306   :  { %v1207_v25 = vpop.permute.xlu1 %1206  ;;  %v1061_v17 = vadd.f32 %v1029_v16, %v864_v45  ;;  %v487_v41 = vadd.f32 %v455_v12, %v290_v39  ;;  %v1622_v42 = vmul.f32 %v3660_v40, %v1537_v44  ;;  %v1243_v26 = vmul.f32 %v3644_v38, %v3695_v53 }
 0x307   :  { %v1456_v32 = vadd.f32 %v1424_v6, %v1259_v11  ;;  %v1063_v13 = vadd.f32 %v1031_v55, %v866_v28  ;;  %v1244_v58 = vmul.f32 %v3644_v38, %v1207_v25 }
 0x308   :  { %v1258_v24 = vadd.f32 %v1226_v9, %v1061_v17  ;;  %v684_v2 = vadd.f32 %v652_v31, %v487_v41 }
 0x309   :  { %v1653_v52 = vadd.f32 %v1621_v35, %v1456_v32  ;;  %v1260_v36 = vadd.f32 %v1228_v27, %v1063_v13  ;;  %v1276_v18 = vadd.f32 %v1244_v58, %v3685_v54  ;;  %v1879_v13 = vlaneseq }
 0x30a   :  { %v1455_v8 = vadd.f32 %v1423_v34, %v1258_v24  ;;  %v881_v33 = vadd.f32 %v849_v46, %v684_v2 }
 0x30b   :  { %v1400_v43 = vpop.permute.xlu1 %1399  ;;  %v1685_v0 = vmax.f32 %v1653_v52, 0.0  ;;  %v1880_v41 = vand.u32 127, %v1879_v13 }
 0x30c   :  { %v1078_v11 = vadd.f32 %v1046_v19, %v881_v33  ;;  %v1440_v63 = vmul.f32 %v3654_v56, %v1400_v43 }
 0x30d   :  { %v1731_v21 = vsel %vm1703_vm0, %v1685_v0, 0.0 }
 0x30e   :  { %v1275_v14 = vadd.f32 %v1243_v26, %v1078_v11 }
 0x310   :  { %v1529_v51 = vpop.permute.xlu1 %1528  ;;  %v1472_v6 = vadd.f32 %v1440_v63, %v1275_v14 }
 0x311   :  { %v1620_v48 = vmul.f32 %v3660_v40, %v1529_v51 }
 0x313   :  { %v1652_v60 = vadd.f32 %v1620_v48, %v1455_v8 }
 0x315   :  { %v1684_v3 = vmax.f32 %v1652_v60, 0.0  ;;  %v1340_v30 = vpop.permute.xlu1 %1339 }
 0x316   :  { %v1425_v57 = vmul.f32 %v3654_v56, %v1340_v30 }
 0x317   :  { %v1729_v15 = vsel %vm1703_vm0, %v1684_v3, 0.0 }
 0x318   :  { %v1730_v16 = vadd.f32 %v1729_v15, %v1728_v37  ;;  %v1457_v47 = vadd.f32 %v1425_v57, %v1260_v36 }
 0x319   :  { %v1404_v22 = vpop.permute.xlu1 %1403 }
 0x31a   :  { %v1732_v45 = vadd.f32 %v1731_v21, %v1730_v16  ;;  %v1654_v9 = vadd.f32 %v1622_v42, %v1457_v47  ;;  %v1441_v20 = vmul.f32 %v3654_v56, %v1404_v22 }
 0x31c   :  { %v1686_v7 = vmax.f32 %v1654_v9, 0.0  ;;  %v1473_v24 = vadd.f32 %v1441_v20, %v1276_v18 }
 0x31e   :  { %v1733_v17 = vsel %vm1703_vm0, %v1686_v7, 0.0  ;;  %v1597_v37 = vpop.permute.xlu1 %1596 }
 0x31f   :  { %v1734_v62 = vadd.f32 %v1733_v17, %v1732_v45  ;;  %v1637_v53 = vmul.f32 %v3660_v40, %v1597_v37 }
 0x321   :  { %v1735_v1 = vrot.slane %v1734_v62, 4  ;;  %v1669_v5 = vadd.f32 %v1637_v53, %v1472_v6 }
 0x322   :  { %v1601_v34 = vpop.permute.xlu1 %1600 }
 0x323   :  { %v1701_v43 = vmax.f32 %v1669_v5, 0.0  ;;  %v1638_v32 = vmul.f32 %v3660_v40, %v1601_v34  ;;  %v1736_v61 = vadd.f32 %v1735_v1, %v1734_v62 }
 0x325   :  { %v1768_v38 = vsel %vm1703_vm0, %v1701_v43, 0.0  ;;  %v1670_v25 = vadd.f32 %v1638_v32, %v1473_v24  ;;  %v1737_v29 = vrot.slane %v1736_v61, 2 }
 0x326   :  { %v1769_v10 = vadd.f32 %v1768_v38, %v3717_v4  ;;  %v1931_v4 = vld [vmem:[%s3802_s4] ss:$0 sm:$0xff] }
 0x327   :  { %v1702_v59 = vmax.f32 %v1670_v25, 0.0  ;;  %v1738_v54 = vadd.f32 %v1737_v29, %v1736_v61 }
 0x329   :  { %v1770_v56 = vsel %vm1703_vm0, %v1702_v59, 0.0  ;;  %v1739_v51 = vrot.slane %v1738_v54, 1 }
 0x32a   :  { %v1771_v35 = vadd.f32 %v1770_v56, %v1769_v10 }
 0x32b   :  { %v1740_v12 = vadd.f32 %v1739_v51, %v1738_v54 }
 0x32c   :  { %v1772_v39 = vrot.slane %v1771_v35, 4 }
 0x32d   :  { %v1778_v8 = vmul.f32 0.0078125, %v1740_v12 }
 0x32e   :  { %v1773_v23 = vadd.f32 %v1772_v39, %v1771_v35 }
 0x330   :  { %v1774_v55 = vrot.slane %v1773_v23, 2 }
 0x332   :  { %v1775_v50 = vadd.f32 %v1774_v55, %v1773_v23 }
 0x334   :  { %v1776_v52 = vrot.slane %v1775_v50, 1 }
 0x336   :  { %v1777_v40 = vadd.f32 %v1776_v52, %v1775_v50 }
 0x338   :  { %v1779_v48 = vmul.f32 0.0078125, %v1777_v40 }
 0x33a   :  { %v1794_v28 = vsel %vm1793_vm2, %v1779_v48, %v1778_v8 }
 0x33b   :  { %1947 = vmatmul.mubr.msk.f32.vlgmr.msra.gmra.mrb[0].mxu0 %vm1703_vm0, %v1794_v28 }
 0x40e   :  { %v1863_v27 = vpop.f32.mrb[0].mxu0 }
 0x40f   :  { %v1864_v49 = vadd.f32 %v1931_v4, %v1863_v27  ;;  %v1948_v31 = vpop.f32.mrb[1].mxu0 }
 0x411   :  { %1906 = vst.msk [vmem:[%s3800_s5] sm:$0x3] %vm1867_vm3, %v1864_v49  ;;  %v1868_v60 = vsel %vm1867_vm3, %v1864_v49, -inf }
 0x412   :  { %1869 = vmax.xlane.f32.xlu0 %v1868_v60 }
 0x49f   :  { %v1870_v46 = vpop.xlane.xlu0 %1869 }
 0x4a0   :  { %v1871_v44 = vsub.f32 %v1864_v49, %v1870_v46  ;;  %vm1881_vm4 = vcmp.eq.f32.partialorder %v1864_v49, %v1870_v46 }
 0x4a1   :  { %v1882_v0 = vsel %vm1881_vm4, %v1880_v41, 10 }
 0x4a2   :  { %v1872_v3 = vmul.f32 1.442695, %v1871_v44  ;;  %v1883_v30 = vsel %vm1867_vm3, %v1882_v0, 2147483647 }
 0x4a3   :  { %v1885_v36 = vshra.s32 %v1883_v30, 16  ;;  %v1884_v15 = vand.u32 65535, %v1883_v30 }
 0x4a4   :  { %2048 = vpow2.f32 %v1872_v3 }
 0x4a5   :  { %v1887_v57 = vcvt.s32.f32 %v1885_v36  ;;  %v1886_v16 = vcvt.s32.f32 %v1884_v15 }
 0x4a7   :  { %1888 = vmin.xlane.f32.xlu0 %v1887_v57 }
 0x4ae   :  { %v2049_v2 = vpop.eup %2048 }
 0x4af   :  { %v1874_v19 = vsel %vm1867_vm3, %v2049_v2, 0.0 }
 0x4b0   :  { %1875 = vadd.xlane.f32.xlu1 %v1874_v19 }
 0x534   :  { %v1889_v42 = vpop.xlane.xlu0 %1888 }
 0x535   :  { %vm1890_vm5 = vcmp.eq.f32.partialorder %v1887_v57, %v1889_v42  ;;  %v1895_v9 = vcvt.f32.s32 %v1889_v42 }
 0x536   :  { %v1891_v47 = vsel %vm1890_vm5, %v1886_v16, inf }
 0x537   :  { %1892 = vmin.xlane.f32.xlu0 %v1891_v47  ;;  %v1896_v63 = vshll.u32 %v1895_v9, 16 }
 0x53d   :  { %v1876_v33 = vpop.xlane.xlu1 %1875 }
 0x53e   :  { %2050 = vrcp.f32 %v1876_v33 }
 0x548   :  { %v2051_v26 = vpop.eup %2050 }
 0x549   :  { %v1878_v21 = vmul.f32 %v2051_v26, %v2049_v2 }
 0x54b   :  { %v1898_v22 = vsel %vm1867_vm3, %v1878_v21, -inf  ;;  %1907 = vst.msk [vmem:[%s3801_s6] sm:$0x3] %vm1867_vm3, %v1878_v21 }
 0x54c   :  { %1899 = vmax.xlane.f32.xlu1 %v1898_v22 }
 0x5c4   :  { %v1893_v45 = vpop.xlane.xlu0 %1892 }
 0x5c5   :  { %v1894_v11 = vcvt.f32.s32 %v1893_v45 }
 0x5c7   :  { %v1897_v7 = vadd.s32 %v1896_v63, %v1894_v11 }
 0x5d9   :  { %v1900_v14 = vpop.xlane.xlu1 %1899 }
 0x5da   :  { %vm1901_vm7 = vcmp.gt.f32.partialorder %v1900_v14, 0.25 }
 0x5db   :  { %v1902_v58 = vsel %vm1901_vm7, %v1897_v7, 4294967295 }
 0x5dc   :  { %1909 = vst.msk [vmem:[%s3795_s7] sm:$0x3] %vm1908_vm6, %v1902_v58 }

</bundles_post_ra>
